<compile_context>
chip_gen: v7x
topology: tpu7x:2x2x1
jax: 0.10.0
libtpu: 0.0.40
codegen_flags: <defaults>
</compile_context>

<pallas_src>
import jax
import jax.numpy as jnp
from jax import lax
from jax.experimental import pallas as pl
from jax.experimental.pallas import tpu as pltpu

# ---------------- problem sizes (small, consistent with the module defaults) ----
B    = 4        # graphs per call (grid axis)
N    = 16       # nodes per graph
FIN  = 8        # input node features
FEIN = 3        # input edge features
FN   = 64       # hidden size (per head)
FE   = 3        # per-head edge-score features
H    = 4        # attention heads
C    = 7        # classes
HFE  = H * FE   # 12 flat score channels

# packed nf-projection slab: every segment starts on a 128-lane boundary
HEAD_STRIDE = 128                 # head h of w_node at [h*128, h*128+FN)
SKIP_OFF = H * HEAD_STRIDE        # 512  : w_skip
NI_OFF   = SKIP_OFF + 128         # 640  : w_ni  (+ b_egat in the bias row)
NJ_OFF   = NI_OFF + 128           # 768  : w_nj
WP_COLS  = NJ_OFF + 128           # 896
WP_ROWS  = 16                     # rows 0:FIN = weights, row FIN = fused bias row

# packed small-weights slab
WS_ROWS, WS_COLS = 72, 256
GCN_C0 = 0                        # w_gcn^T at [0:FN, 0:FN]
FC_C0  = 128                      # w_fc^T (zero padded to 128 classes) at [0:FN, 128:256]
BGCN_R = 64                       # b_gcn row
BFC_R  = 65                       # b_fc row (cols 128:256)

OUTP = 128                        # lane-dense padded class dimension of the output
NW   = HFE * FEIN                 # 36 w_fij scalars in the SMEM table (then HFE attn scalars)
NCH  = FEIN + 1                   # edge-feature channels + adjacency channel


def _rgat_skip_kernel(scal_ref, nf_ref, efa_ref, wpack_ref, wsmall_ref, out_ref):
    f32 = jnp.float32
    nf   = nf_ref[0]            # (N, FIN)             node features of this graph
    ef0  = efa_ref[0, 0]        # (N, N)  (dst, src)   edge-feature channels
    ef1  = efa_ref[0, 1]
    ef2  = efa_ref[0, 2]
    adjt = efa_ref[0, FEIN]     # (N, N)               adjt[d, s] = adj[s, d]

    # ---- single fused projection of the node features (w_node|w_skip|w_ni|w_nj) + bias row
    wpk   = wpack_ref[0:FIN, :]                  # (FIN, WP_COLS)
    brow  = wpack_ref[FIN:FIN + 1, :]            # (1, WP_COLS)
    h_all = jnp.dot(nf, wpk, preferred_element_type=f32) + brow   # (N, WP_COLS)

    # identity matrix: reused for the column->row flip trick and the GCN self loops
    rix = lax.broadcasted_iota(jnp.int32, (N, N), 0)
    cix = lax.broadcasted_iota(jnp.int32, (N, N), 1)
    eye = jnp.where(rix == cix, 1.0, 0.0)
    mask = adjt > 0.0                             # hoisted: reused by every head

    # ---- edge attention: scores -> masked per-destination softmax -> aggregation
    x = None
    for h in range(H):
        e_h = None                                # (dst, src) scores of head h
        for k in range(FE):
            c = h * FE + k                        # flat score channel
            # projected edge features for channel c, (dst, src) layout (VPU, no matmul)
            f_c = (scal_ref[c * FEIN + 0] * ef0
                   + scal_ref[c * FEIN + 1] * ef1
                   + scal_ref[c * FEIN + 2] * ef2)
            ni_col = h_all[:, NI_OFF + c:NI_OFF + c + 1]             # (N,1) f_ni[:,c]+b_egat[c]
            ni_row = jnp.sum(eye * ni_col, axis=0, keepdims=True)    # (1,N) same values on lanes
            nj_col = h_all[:, NJ_OFF + c:NJ_OFF + c + 1]             # (N,1) f_nj[:,c]
            m_c = ni_row + nj_col + f_c                              # m_c[d,s] = f_out[s,d,c]
            m_c = jnp.where(m_c > 0, m_c, 0.01 * m_c)                # leaky_relu
            t = scal_ref[NW + c] * m_c                               # * attn[h,k]
            e_h = t if e_h is None else e_h + t

        # masked softmax over source nodes (lane axis) with a per-destination max
        e_m  = jnp.where(mask, e_h, -1e30)
        mmax = jnp.max(e_m, axis=1, keepdims=True)                   # (N,1)
        p    = jnp.where(mask, jnp.exp(e_m - mmax), 0.0)
        den  = jnp.sum(p, axis=1, keepdims=True)                     # (N,1)
        rden = jnp.where(den > 0, pl.reciprocal(den, approx=True), 0.0)
        a_h  = p * rden                                              # (dst, src)

        # genuine reduction stays on the MXU: per-head (N,N)@(N,FN) matmul
        hp_h  = h_all[:, h * HEAD_STRIDE:h * HEAD_STRIDE + FN]       # (src, FN), 128-aligned
        agg_h = jnp.dot(a_h, hp_h, preferred_element_type=f32)       # (dst, FN)
        x = agg_h if x is None else jnp.maximum(x, agg_h)            # running head max

    x = jnp.maximum(x, 0.0)                                          # relu

    # ---- degree-normalised propagation D^-1/2 (A+I) D^-1/2, derived in-kernel
    a_sl_t = adjt + eye                                              # (A + I)^T
    deg_v  = jnp.sum(a_sl_t, axis=1, keepdims=True)                  # (N,1) degrees
    dinv_v = lax.rsqrt(deg_v)
    dinv_u = jnp.sum(eye * dinv_v, axis=0, keepdims=True)            # (1,N) same values on lanes
    m_norm = a_sl_t * dinv_v * dinv_u                                # = (D^-1/2 (A+I) D^-1/2)^T

    w_gcn_t = wsmall_ref[0:FN, GCN_C0:GCN_C0 + FN]                   # (FN, FN)
    b_gcn   = wsmall_ref[BGCN_R:BGCN_R + 1, GCN_C0:GCN_C0 + FN]      # (1, FN)
    x_lin = jnp.dot(x, w_gcn_t, preferred_element_type=f32)
    x_gcn = jnp.dot(m_norm, x_lin, preferred_element_type=f32) + b_gcn

    # ---- skip connection + classifier + masked log_softmax into a lane-dense slab
    x2 = x_gcn + h_all[:, SKIP_OFF:SKIP_OFF + FN]
    w_fc_t = wsmall_ref[0:FN, FC_C0:FC_C0 + OUTP]                    # (FN, 128), cols >= C are 0
    b_fc   = wsmall_ref[BFC_R:BFC_R + 1, FC_C0:FC_C0 + OUTP]         # (1, 128)
    logits = jnp.dot(x2, w_fc_t, preferred_element_type=f32) + b_fc  # (N, 128)

    cls   = lax.broadcasted_iota(jnp.int32, (N, OUTP), 1)
    valid = cls < C
    lg    = jnp.where(valid, logits, -1e30)
    lmax  = jnp.max(lg, axis=1, keepdims=True)
    ex    = jnp.where(valid, jnp.exp(lg - lmax), 0.0)
    lse   = jnp.log(jnp.sum(ex, axis=1, keepdims=True))
    out_ref[0] = jnp.where(valid, lg - lmax - lse, 0.0)


# ------------------------------ host-side glue ------------------------------
def pack_params(p):
    """Pack weights/biases into two lane-aligned VMEM slabs + one SMEM scalar table.

    Done once, outside the per-call hot path (hoisted constant glue).
    """
    f32 = jnp.float32
    wpack = jnp.zeros((WP_ROWS, WP_COLS), f32)
    w_node_t = p['w_node'].T.astype(f32)                        # (FIN, H*FN)
    for h in range(H):
        c0 = h * HEAD_STRIDE
        wpack = wpack.at[0:FIN, c0:c0 + FN].set(w_node_t[:, h * FN:(h + 1) * FN])
        wpack = wpack.at[FIN, c0:c0 + FN].set(p['b_node'][h * FN:(h + 1) * FN])
    wpack = wpack.at[0:FIN, SKIP_OFF:SKIP_OFF + FN].set(p['w_skip'].T)
    wpack = wpack.at[FIN, SKIP_OFF:SKIP_OFF + FN].set(p['b_skip'])
    wpack = wpack.at[0:FIN, NI_OFF:NI_OFF + HFE].set(p['w_ni'].T)
    wpack = wpack.at[FIN, NI_OFF:NI_OFF + HFE].set(p['b_egat'])
    wpack = wpack.at[0:FIN, NJ_OFF:NJ_OFF + HFE].set(p['w_nj'].T)

    wsmall = jnp.zeros((WS_ROWS, WS_COLS), f32)
    wsmall = wsmall.at[0:FN, GCN_C0:GCN_C0 + FN].set(p['w_gcn'].T)
    wsmall = wsmall.at[0:FN, FC_C0:FC_C0 + C].set(p['w_fc'].T)
    wsmall = wsmall.at[BGCN_R, GCN_C0:GCN_C0 + FN].set(p['b_gcn'])
    wsmall = wsmall.at[BFC_R, FC_C0:FC_C0 + C].set(p['b_fc'])

    scal = jnp.concatenate([p['w_fij'].reshape(-1), p['attn'].reshape(-1)]).astype(f32)  # (48,)
    return wpack, wsmall, scal


@jax.jit
def rgat_forward(nfeats, efeats, adj, wpack, wsmall, scal):
    """nfeats (B,N,FIN), efeats (B,N,N,FEIN) [src,dst,feat], adj (B,N,N) [src,dst]."""
    f32 = jnp.float32
    bsz = nfeats.shape[0]
    # edge features to (B, FEIN, N_dst, N_src) and fold the transposed adjacency in
    # as one more channel -> one operand / one DMA per grid step instead of two.
    eft  = jnp.transpose(efeats, (0, 3, 2, 1)).astype(f32)      # (B, FEIN, N_dst, N_src)
    adjt = jnp.transpose(adj, (0, 2, 1)).astype(f32)[:, None]   # (B, 1,    N_dst, N_src)
    efa  = jnp.concatenate([eft, adjt], axis=1)                 # (B, NCH,  N_dst, N_src)

    grid_spec = pltpu.PrefetchScalarGridSpec(
        num_scalar_prefetch=1,
        grid=(bsz,),
        in_specs=[
            pl.BlockSpec((1, N, FIN), lambda b, s: (b, 0, 0)),
            pl.BlockSpec((1, NCH, N, N), lambda b, s: (b, 0, 0, 0)),
            pl.BlockSpec((WP_ROWS, WP_COLS), lambda b, s: (0, 0)),   # weights: same block every step
            pl.BlockSpec((WS_ROWS, WS_COLS), lambda b, s: (0, 0)),
        ],
        out_specs=pl.BlockSpec((1, N, OUTP), lambda b, s: (b, 0, 0)),
    )
    out_pad = pl.pallas_call(
        _rgat_skip_kernel,
        out_shape=jax.ShapeDtypeStruct((bsz, N, OUTP), f32),
        grid_spec=grid_spec,
        compiler_params=pltpu.CompilerParams(
            dimension_semantics=("parallel",)),                      # lets v7x use both TCs
    )(scal, nfeats.astype(f32), efa, wpack, wsmall)
    return out_pad[:, :, :C]


# ------------------------ pure-JAX reference (sanity check) ------------------------
def _reference_single(nf, ef3, adj, p):
    f_ni  = nf @ p['w_ni'].T
    f_nj  = nf @ p['w_nj'].T
    f_fij = jnp.einsum('sde,ke->sdk', ef3, p['w_fij'])
    f_out = f_ni[:, None, :] + f_nj[None, :, :] + f_fij + p['b_egat']
    f_out = jax.nn.leaky_relu(f_out, negative_slope=0.01)
    e = jnp.einsum('sdhf,hf->sdh', f_out.reshape(N, N, H, FE), p['attn'])
    mask3 = adj[:, :, None] > 0
    a = jax.nn.softmax(jnp.where(mask3, e, -jnp.inf), axis=0)
    a = jnp.where(mask3, a, 0.0)
    h_proj = (nf @ p['w_node'].T + p['b_node']).reshape(N, H, FN)
    h_out = jnp.einsum('sdh,shf->dhf', a, h_proj)
    x = jax.nn.relu(jnp.max(h_out, axis=1))
    a_sl = adj + jnp.eye(N)
    deg = a_sl.sum(axis=0)
    dinv = 1.0 / jnp.sqrt(deg)
    a_norm = a_sl * dinv[:, None] * dinv[None, :]
    x_gcn = a_norm.T @ (x @ p['w_gcn'].T) + p['b_gcn']
    x_skip = nf @ p['w_skip'].T + p['b_skip']
    logits = (x_gcn + x_skip) @ p['w_fc'].T + p['b_fc']
    return jax.nn.log_softmax(logits, axis=1)


def reference(nfeats, efeats, adj, p):
    return jax.vmap(lambda a, b, c: _reference_single(a, b, c, p))(nfeats, efeats, adj)


def _xavier(key, out_dim, in_dim, gain=1.0):
    std = gain * (2.0 / (in_dim + out_dim)) ** 0.5
    return std * jax.random.normal(key, (out_dim, in_dim), jnp.float32)


if __name__ == "__main__":
    key = jax.random.PRNGKey(0)
    ks = jax.random.split(key, 16)

    # small batched directed graphs: random edges + a ring so every node has an in-edge
    adj = (jax.random.uniform(ks[0], (B, N, N)) < 0.3).astype(jnp.float32)
    adj = adj * (1.0 - jnp.eye(N, dtype=jnp.float32))
    ring = jnp.roll(jnp.eye(N, dtype=jnp.float32), 1, axis=1)
    adj = jnp.maximum(adj, ring[None])

    nfeats = jax.random.normal(ks[1], (B, N, FIN), jnp.float32)
    efeats = jax.random.normal(ks[2], (B, N, N, FEIN), jnp.float32)

    gain = 2.0 ** 0.5  # relu gain
    params = {
        'w_ni':   _xavier(ks[3],  HFE, FIN,  gain),
        'w_nj':   _xavier(ks[4],  HFE, FIN,  gain),
        'w_fij':  _xavier(ks[5],  HFE, FEIN, gain),
        'w_node': _xavier(ks[6],  H * FN, FIN, gain),
        'b_node': 0.1 * jax.random.normal(ks[7], (H * FN,), jnp.float32),
        'attn':   0.5 * jax.random.normal(ks[8], (H, FE), jnp.float32),
        'b_egat': jnp.zeros((HFE,), jnp.float32),
        'w_skip': _xavier(ks[9],  FN, FIN),
        'b_skip': 0.1 * jax.random.normal(ks[10], (FN,), jnp.float32),
        'w_gcn':  _xavier(ks[11], FN, FN),
        'b_gcn':  0.1 * jax.random.normal(ks[12], (FN,), jnp.float32),
        'w_fc':   _xavier(ks[13], C, FN),
        'b_fc':   0.1 * jax.random.normal(ks[14], (C,), jnp.float32),
    }

    wpack, wsmall, scal = pack_params(params)      # packed once (hoisted constant glue)

    out = rgat_forward(nfeats, efeats, adj, wpack, wsmall, scal)
    out = jax.block_until_ready(out)

    ref = reference(nfeats, efeats, adj, params)
    assert out.shape == (B, N, C)
    assert bool(jnp.all(jnp.isfinite(out)))
    # tolerance covers the approx-reciprocal (EUP) softmax denominator
    assert bool(jnp.allclose(out, ref, atol=5e-3, rtol=5e-3)), float(jnp.max(jnp.abs(out - ref)))
    print("KERNEL_OK")
</pallas_src>

<mosaic_0001>
module attributes {stable_mosaic.version = 11 : i64} {
  func.func @_rgat_skip_kernel(%arg0: i32, %arg1: memref<48xf32, #tpu.memory_space<smem>>, %arg2: memref<1x16x8xf32, #tpu.memory_space<vmem>>, %arg3: memref<1x4x16x16xf32, #tpu.memory_space<vmem>>, %arg4: memref<16x896xf32, #tpu.memory_space<vmem>>, %arg5: memref<72x256xf32, #tpu.memory_space<vmem>>, %arg6: memref<1x16x128xf32, #tpu.memory_space<vmem>>) attributes {dimension_semantics = [#tpu.dimension_semantics<parallel>], iteration_bounds = array<i64: 4>, scalar_prefetch = 1 : i64, scratch_operands = 0 : i64, tpu.core_type = #tpu.core_type<tc>, window_params = [{transform_indices = @transform_0, window_bounds = array<i64: 1, 16, 8>}, {transform_indices = @transform_1, window_bounds = array<i64: 1, 4, 16, 16>}, {pipeline_mode = #tpu.pipeline_mode<synchronous>, transform_indices = @transform_2, window_bounds = array<i64: 16, 896>}, {pipeline_mode = #tpu.pipeline_mode<synchronous>, transform_indices = @transform_3, window_bounds = array<i64: 72, 256>}, {transform_indices = @transform_4, window_bounds = array<i64: 1, 16, 128>}]} {
    %c0 = arith.constant 0 : index
    %c0_0 = arith.constant 0 : index
    %c0_1 = arith.constant 0 : index
    %0 = vector.load %arg2[%c0, %c0_0, %c0_1] : memref<1x16x8xf32, #tpu.memory_space<vmem>>, vector<1x16x8xf32>
    %1 = vector.shape_cast %0 : vector<1x16x8xf32> to vector<16x8xf32>
    %c0_2 = arith.constant 0 : index
    %c0_3 = arith.constant 0 : index
    %c0_4 = arith.constant 0 : index
    %c0_5 = arith.constant 0 : index
    %2 = vector.load %arg3[%c0_2, %c0_3, %c0_4, %c0_5] : memref<1x4x16x16xf32, #tpu.memory_space<vmem>>, vector<1x1x16x16xf32>
    %3 = vector.shape_cast %2 : vector<1x1x16x16xf32> to vector<16x16xf32>
    %c0_6 = arith.constant 0 : index
    %c1 = arith.constant 1 : index
    %c0_7 = arith.constant 0 : index
    %c0_8 = arith.constant 0 : index
    %4 = vector.load %arg3[%c0_6, %c1, %c0_7, %c0_8] : memref<1x4x16x16xf32, #tpu.memory_space<vmem>>, vector<1x1x16x16xf32>
    %5 = vector.shape_cast %4 : vector<1x1x16x16xf32> to vector<16x16xf32>
    %c0_9 = arith.constant 0 : index
    %c2 = arith.constant 2 : index
    %c0_10 = arith.constant 0 : index
    %c0_11 = arith.constant 0 : index
    %6 = vector.load %arg3[%c0_9, %c2, %c0_10, %c0_11] : memref<1x4x16x16xf32, #tpu.memory_space<vmem>>, vector<1x1x16x16xf32>
    %7 = vector.shape_cast %6 : vector<1x1x16x16xf32> to vector<16x16xf32>
    %c0_12 = arith.constant 0 : index
    %c3 = arith.constant 3 : index
    %c0_13 = arith.constant 0 : index
    %c0_14 = arith.constant 0 : index
    %8 = vector.load %arg3[%c0_12, %c3, %c0_13, %c0_14] : memref<1x4x16x16xf32, #tpu.memory_space<vmem>>, vector<1x1x16x16xf32>
    %9 = vector.shape_cast %8 : vector<1x1x16x16xf32> to vector<16x16xf32>
    %c0_15 = arith.constant 0 : index
    %c0_16 = arith.constant 0 : index
    %10 = vector.load %arg4[%c0_15, %c0_16] : memref<16x896xf32, #tpu.memory_space<vmem>>, vector<8x896xf32>
    %c8 = arith.constant 8 : index
    %c0_17 = arith.constant 0 : index
    %11 = vector.load %arg4[%c8, %c0_17] : memref<16x896xf32, #tpu.memory_space<vmem>>, vector<1x896xf32>
    %cst = arith.constant dense<0.000000e+00> : vector<16x896xf32>
    %12 = tpu.matmul %1, %10, %cst {dimension_numbers = #tpu.dot_dimension_numbers<[1], [0], [0], [1], [0, 0, 1, 1], [], []>} : vector<16x8xf32>, vector<8x896xf32>, vector<16x896xf32> -> vector<16x896xf32>
    %13 = vector.broadcast %11 : vector<1x896xf32> to vector<16x896xf32>
    %14 = arith.addf %12, %13 : vector<16x896xf32>
    %15 = tpu.iota {dimensions = array<i32: 0>} : vector<16x16xi32>
    %16 = tpu.iota {dimensions = array<i32: 1>} : vector<16x16xi32>
    %17 = arith.cmpi eq, %15, %16 : vector<16x16xi32>
    %cst_18 = arith.constant 1.000000e+00 : f32
    %cst_19 = arith.constant 0.000000e+00 : f32
    %18 = vector.broadcast %cst_18 : f32 to vector<16x16xf32>
    %19 = vector.broadcast %cst_19 : f32 to vector<16x16xf32>
    %20 = arith.select %17, %18, %19 : vector<16x16xi1>, vector<16x16xf32>
    %cst_20 = arith.constant 0.000000e+00 : f32
    %21 = vector.broadcast %cst_20 : f32 to vector<16x16xf32>
    %22 = arith.cmpf ogt, %9, %21 : vector<16x16xf32>
    %c0_21 = arith.constant 0 : index
    %23 = memref.load %arg1[%c0_21] : memref<48xf32, #tpu.memory_space<smem>>
    %24 = vector.broadcast %23 : f32 to vector<16x16xf32>
    %25 = arith.mulf %24, %3 : vector<16x16xf32>
    %c1_22 = arith.constant 1 : index
    %26 = memref.load %arg1[%c1_22] : memref<48xf32, #tpu.memory_space<smem>>
    %27 = vector.broadcast %26 : f32 to vector<16x16xf32>
    %28 = arith.mulf %27, %5 : vector<16x16xf32>
    %29 = arith.addf %25, %28 : vector<16x16xf32>
    %c2_23 = arith.constant 2 : index
    %30 = memref.load %arg1[%c2_23] : memref<48xf32, #tpu.memory_space<smem>>
    %31 = vector.broadcast %30 : f32 to vector<16x16xf32>
    %32 = arith.mulf %31, %7 : vector<16x16xf32>
    %33 = arith.addf %29, %32 : vector<16x16xf32>
    %34 = vector.extract_strided_slice %14 {offsets = [0, 640], sizes = [16, 1], strides = [1, 1]} : vector<16x896xf32> to vector<16x1xf32>
    %35 = vector.broadcast %34 : vector<16x1xf32> to vector<16x16xf32>
    %36 = arith.mulf %20, %35 : vector<16x16xf32>
    %cst_24 = arith.constant dense<0.000000e+00> : vector<16xf32>
    %37 = vector.multi_reduction <add>, %36, %cst_24 [0] : vector<16x16xf32> to vector<16xf32>
    %38 = vector.shape_cast %37 : vector<16xf32> to vector<1x16xf32>
    %39 = vector.extract_strided_slice %14 {offsets = [0, 768], sizes = [16, 1], strides = [1, 1]} : vector<16x896xf32> to vector<16x1xf32>
    %40 = vector.broadcast %38 : vector<1x16xf32> to vector<16x16xf32>
    %41 = vector.broadcast %39 : vector<16x1xf32> to vector<16x16xf32>
    %42 = arith.addf %40, %41 : vector<16x16xf32>
    %43 = arith.addf %42, %33 : vector<16x16xf32>
    %cst_25 = arith.constant 0.000000e+00 : f32
    %44 = vector.broadcast %cst_25 : f32 to vector<16x16xf32>
    %45 = arith.cmpf ogt, %43, %44 : vector<16x16xf32>
    %cst_26 = arith.constant 0.00999999977 : f32
    %46 = vector.broadcast %cst_26 : f32 to vector<16x16xf32>
    %47 = arith.mulf %46, %43 : vector<16x16xf32>
    %48 = arith.select %45, %43, %47 : vector<16x16xi1>, vector<16x16xf32>
    %c36 = arith.constant 36 : index
    %49 = memref.load %arg1[%c36] : memref<48xf32, #tpu.memory_space<smem>>
    %50 = vector.broadcast %49 : f32 to vector<16x16xf32>
    %51 = arith.mulf %50, %48 : vector<16x16xf32>
    %c3_27 = arith.constant 3 : index
    %52 = memref.load %arg1[%c3_27] : memref<48xf32, #tpu.memory_space<smem>>
    %53 = vector.broadcast %52 : f32 to vector<16x16xf32>
    %54 = arith.mulf %53, %3 : vector<16x16xf32>
    %c4 = arith.constant 4 : index
    %55 = memref.load %arg1[%c4] : memref<48xf32, #tpu.memory_space<smem>>
    %56 = vector.broadcast %55 : f32 to vector<16x16xf32>
    %57 = arith.mulf %56, %5 : vector<16x16xf32>
    %58 = arith.addf %54, %57 : vector<16x16xf32>
    %c5 = arith.constant 5 : index
    %59 = memref.load %arg1[%c5] : memref<48xf32, #tpu.memory_space<smem>>
    %60 = vector.broadcast %59 : f32 to vector<16x16xf32>
    %61 = arith.mulf %60, %7 : vector<16x16xf32>
    %62 = arith.addf %58, %61 : vector<16x16xf32>
    %63 = vector.extract_strided_slice %14 {offsets = [0, 641], sizes = [16, 1], strides = [1, 1]} : vector<16x896xf32> to vector<16x1xf32>
    %64 = vector.broadcast %63 : vector<16x1xf32> to vector<16x16xf32>
    %65 = arith.mulf %20, %64 : vector<16x16xf32>
    %cst_28 = arith.constant dense<0.000000e+00> : vector<16xf32>
    %66 = vector.multi_reduction <add>, %65, %cst_28 [0] : vector<16x16xf32> to vector<16xf32>
    %67 = vector.shape_cast %66 : vector<16xf32> to vector<1x16xf32>
    %68 = vector.extract_strided_slice %14 {offsets = [0, 769], sizes = [16, 1], strides = [1, 1]} : vector<16x896xf32> to vector<16x1xf32>
    %69 = vector.broadcast %67 : vector<1x16xf32> to vector<16x16xf32>
    %70 = vector.broadcast %68 : vector<16x1xf32> to vector<16x16xf32>
    %71 = arith.addf %69, %70 : vector<16x16xf32>
    %72 = arith.addf %71, %62 : vector<16x16xf32>
    %cst_29 = arith.constant 0.000000e+00 : f32
    %73 = vector.broadcast %cst_29 : f32 to vector<16x16xf32>
    %74 = arith.cmpf ogt, %72, %73 : vector<16x16xf32>
    %cst_30 = arith.constant 0.00999999977 : f32
    %75 = vector.broadcast %cst_30 : f32 to vector<16x16xf32>
    %76 = arith.mulf %75, %72 : vector<16x16xf32>
    %77 = arith.select %74, %72, %76 : vector<16x16xi1>, vector<16x16xf32>
    %c37 = arith.constant 37 : index
    %78 = memref.load %arg1[%c37] : memref<48xf32, #tpu.memory_space<smem>>
    %79 = vector.broadcast %78 : f32 to vector<16x16xf32>
    %80 = arith.mulf %79, %77 : vector<16x16xf32>
    %81 = arith.addf %51, %80 : vector<16x16xf32>
    %c6 = arith.constant 6 : index
    %82 = memref.load %arg1[%c6] : memref<48xf32, #tpu.memory_space<smem>>
    %83 = vector.broadcast %82 : f32 to vector<16x16xf32>
    %84 = arith.mulf %83, %3 : vector<16x16xf32>
    %c7 = arith.constant 7 : index
    %85 = memref.load %arg1[%c7] : memref<48xf32, #tpu.memory_space<smem>>
    %86 = vector.broadcast %85 : f32 to vector<16x16xf32>
    %87 = arith.mulf %86, %5 : vector<16x16xf32>
    %88 = arith.addf %84, %87 : vector<16x16xf32>
    %c8_31 = arith.constant 8 : index
    %89 = memref.load %arg1[%c8_31] : memref<48xf32, #tpu.memory_space<smem>>
    %90 = vector.broadcast %89 : f32 to vector<16x16xf32>
    %91 = arith.mulf %90, %7 : vector<16x16xf32>
    %92 = arith.addf %88, %91 : vector<16x16xf32>
    %93 = vector.extract_strided_slice %14 {offsets = [0, 642], sizes = [16, 1], strides = [1, 1]} : vector<16x896xf32> to vector<16x1xf32>
    %94 = vector.broadcast %93 : vector<16x1xf32> to vector<16x16xf32>
    %95 = arith.mulf %20, %94 : vector<16x16xf32>
    %cst_32 = arith.constant dense<0.000000e+00> : vector<16xf32>
    %96 = vector.multi_reduction <add>, %95, %cst_32 [0] : vector<16x16xf32> to vector<16xf32>
    %97 = vector.shape_cast %96 : vector<16xf32> to vector<1x16xf32>
    %98 = vector.extract_strided_slice %14 {offsets = [0, 770], sizes = [16, 1], strides = [1, 1]} : vector<16x896xf32> to vector<16x1xf32>
    %99 = vector.broadcast %97 : vector<1x16xf32> to vector<16x16xf32>
    %100 = vector.broadcast %98 : vector<16x1xf32> to vector<16x16xf32>
    %101 = arith.addf %99, %100 : vector<16x16xf32>
    %102 = arith.addf %101, %92 : vector<16x16xf32>
    %cst_33 = arith.constant 0.000000e+00 : f32
    %103 = vector.broadcast %cst_33 : f32 to vector<16x16xf32>
    %104 = arith.cmpf ogt, %102, %103 : vector<16x16xf32>
    %cst_34 = arith.constant 0.00999999977 : f32
    %105 = vector.broadcast %cst_34 : f32 to vector<16x16xf32>
    %106 = arith.mulf %105, %102 : vector<16x16xf32>
    %107 = arith.select %104, %102, %106 : vector<16x16xi1>, vector<16x16xf32>
    %c38 = arith.constant 38 : index
    %108 = memref.load %arg1[%c38] : memref<48xf32, #tpu.memory_space<smem>>
    %109 = vector.broadcast %108 : f32 to vector<16x16xf32>
    %110 = arith.mulf %109, %107 : vector<16x16xf32>
    %111 = arith.addf %81, %110 : vector<16x16xf32>
    %cst_35 = arith.constant -1.000000e+30 : f32
    %112 = vector.broadcast %cst_35 : f32 to vector<16x16xf32>
    %113 = arith.select %22, %111, %112 : vector<16x16xi1>, vector<16x16xf32>
    %cst_36 = arith.constant dense<0xFF800000> : vector<16xf32>
    %114 = vector.multi_reduction <maximumf>, %113, %cst_36 [1] : vector<16x16xf32> to vector<16xf32>
    %115 = vector.shape_cast %114 : vector<16xf32> to vector<16x1xf32>
    %116 = vector.broadcast %115 : vector<16x1xf32> to vector<16x16xf32>
    %117 = arith.subf %113, %116 : vector<16x16xf32>
    %118 = math.exp %117 : vector<16x16xf32>
    %cst_37 = arith.constant 0.000000e+00 : f32
    %119 = vector.broadcast %cst_37 : f32 to vector<16x16xf32>
    %120 = arith.select %22, %118, %119 : vector<16x16xi1>, vector<16x16xf32>
    %cst_38 = arith.constant dense<0.000000e+00> : vector<16xf32>
    %121 = vector.multi_reduction <add>, %120, %cst_38 [1] : vector<16x16xf32> to vector<16xf32>
    %122 = vector.shape_cast %121 : vector<16xf32> to vector<16x1xf32>
    %cst_39 = arith.constant 0.000000e+00 : f32
    %123 = vector.broadcast %cst_39 : f32 to vector<16x1xf32>
    %124 = arith.cmpf ogt, %122, %123 : vector<16x1xf32>
    %125 = tpu.reciprocal %122 {approx = true} : vector<16x1xf32> -> vector<16x1xf32>
    %cst_40 = arith.constant 0.000000e+00 : f32
    %126 = vector.broadcast %cst_40 : f32 to vector<16x1xf32>
    %127 = arith.select %124, %125, %126 : vector<16x1xi1>, vector<16x1xf32>
    %128 = vector.broadcast %127 : vector<16x1xf32> to vector<16x16xf32>
    %129 = arith.mulf %120, %128 : vector<16x16xf32>
    %130 = vector.extract_strided_slice %14 {offsets = [0, 0], sizes = [16, 64], strides = [1, 1]} : vector<16x896xf32> to vector<16x64xf32>
    %cst_41 = arith.constant dense<0.000000e+00> : vector<16x64xf32>
    %131 = tpu.matmul %129, %130, %cst_41 {dimension_numbers = #tpu.dot_dimension_numbers<[1], [0], [0], [1], [0, 0, 1, 1], [], []>} : vector<16x16xf32>, vector<16x64xf32>, vector<16x64xf32> -> vector<16x64xf32>
    %c9 = arith.constant 9 : index
    %132 = memref.load %arg1[%c9] : memref<48xf32, #tpu.memory_space<smem>>
    %133 = vector.broadcast %132 : f32 to vector<16x16xf32>
    %134 = arith.mulf %133, %3 : vector<16x16xf32>
    %c10 = arith.constant 10 : index
    %135 = memref.load %arg1[%c10] : memref<48xf32, #tpu.memory_space<smem>>
    %136 = vector.broadcast %135 : f32 to vector<16x16xf32>
    %137 = arith.mulf %136, %5 : vector<16x16xf32>
    %138 = arith.addf %134, %137 : vector<16x16xf32>
    %c11 = arith.constant 11 : index
    %139 = memref.load %arg1[%c11] : memref<48xf32, #tpu.memory_space<smem>>
    %140 = vector.broadcast %139 : f32 to vector<16x16xf32>
    %141 = arith.mulf %140, %7 : vector<16x16xf32>
    %142 = arith.addf %138, %141 : vector<16x16xf32>
    %143 = vector.extract_strided_slice %14 {offsets = [0, 643], sizes = [16, 1], strides = [1, 1]} : vector<16x896xf32> to vector<16x1xf32>
    %144 = vector.broadcast %143 : vector<16x1xf32> to vector<16x16xf32>
    %145 = arith.mulf %20, %144 : vector<16x16xf32>
    %cst_42 = arith.constant dense<0.000000e+00> : vector<16xf32>
    %146 = vector.multi_reduction <add>, %145, %cst_42 [0] : vector<16x16xf32> to vector<16xf32>
    %147 = vector.shape_cast %146 : vector<16xf32> to vector<1x16xf32>
    %148 = vector.extract_strided_slice %14 {offsets = [0, 771], sizes = [16, 1], strides = [1, 1]} : vector<16x896xf32> to vector<16x1xf32>
    %149 = vector.broadcast %147 : vector<1x16xf32> to vector<16x16xf32>
    %150 = vector.broadcast %148 : vector<16x1xf32> to vector<16x16xf32>
    %151 = arith.addf %149, %150 : vector<16x16xf32>
    %152 = arith.addf %151, %142 : vector<16x16xf32>
    %cst_43 = arith.constant 0.000000e+00 : f32
    %153 = vector.broadcast %cst_43 : f32 to vector<16x16xf32>
    %154 = arith.cmpf ogt, %152, %153 : vector<16x16xf32>
    %cst_44 = arith.constant 0.00999999977 : f32
    %155 = vector.broadcast %cst_44 : f32 to vector<16x16xf32>
    %156 = arith.mulf %155, %152 : vector<16x16xf32>
    %157 = arith.select %154, %152, %156 : vector<16x16xi1>, vector<16x16xf32>
    %c39 = arith.constant 39 : index
    %158 = memref.load %arg1[%c39] : memref<48xf32, #tpu.memory_space<smem>>
    %159 = vector.broadcast %158 : f32 to vector<16x16xf32>
    %160 = arith.mulf %159, %157 : vector<16x16xf32>
    %c12 = arith.constant 12 : index
    %161 = memref.load %arg1[%c12] : memref<48xf32, #tpu.memory_space<smem>>
    %162 = vector.broadcast %161 : f32 to vector<16x16xf32>
    %163 = arith.mulf %162, %3 : vector<16x16xf32>
    %c13 = arith.constant 13 : index
    %164 = memref.load %arg1[%c13] : memref<48xf32, #tpu.memory_space<smem>>
    %165 = vector.broadcast %164 : f32 to vector<16x16xf32>
    %166 = arith.mulf %165, %5 : vector<16x16xf32>
    %167 = arith.addf %163, %166 : vector<16x16xf32>
    %c14 = arith.constant 14 : index
    %168 = memref.load %arg1[%c14] : memref<48xf32, #tpu.memory_space<smem>>
    %169 = vector.broadcast %168 : f32 to vector<16x16xf32>
    %170 = arith.mulf %169, %7 : vector<16x16xf32>
    %171 = arith.addf %167, %170 : vector<16x16xf32>
    %172 = vector.extract_strided_slice %14 {offsets = [0, 644], sizes = [16, 1], strides = [1, 1]} : vector<16x896xf32> to vector<16x1xf32>
    %173 = vector.broadcast %172 : vector<16x1xf32> to vector<16x16xf32>
    %174 = arith.mulf %20, %173 : vector<16x16xf32>
    %cst_45 = arith.constant dense<0.000000e+00> : vector<16xf32>
    %175 = vector.multi_reduction <add>, %174, %cst_45 [0] : vector<16x16xf32> to vector<16xf32>
    %176 = vector.shape_cast %175 : vector<16xf32> to vector<1x16xf32>
    %177 = vector.extract_strided_slice %14 {offsets = [0, 772], sizes = [16, 1], strides = [1, 1]} : vector<16x896xf32> to vector<16x1xf32>
    %178 = vector.broadcast %176 : vector<1x16xf32> to vector<16x16xf32>
    %179 = vector.broadcast %177 : vector<16x1xf32> to vector<16x16xf32>
    %180 = arith.addf %178, %179 : vector<16x16xf32>
    %181 = arith.addf %180, %171 : vector<16x16xf32>
    %cst_46 = arith.constant 0.000000e+00 : f32
    %182 = vector.broadcast %cst_46 : f32 to vector<16x16xf32>
    %183 = arith.cmpf ogt, %181, %182 : vector<16x16xf32>
    %cst_47 = arith.constant 0.00999999977 : f32
    %184 = vector.broadcast %cst_47 : f32 to vector<16x16xf32>
    %185 = arith.mulf %184, %181 : vector<16x16xf32>
    %186 = arith.select %183, %181, %185 : vector<16x16xi1>, vector<16x16xf32>
    %c40 = arith.constant 40 : index
    %187 = memref.load %arg1[%c40] : memref<48xf32, #tpu.memory_space<smem>>
    %188 = vector.broadcast %187 : f32 to vector<16x16xf32>
    %189 = arith.mulf %188, %186 : vector<16x16xf32>
    %190 = arith.addf %160, %189 : vector<16x16xf32>
    %c15 = arith.constant 15 : index
    %191 = memref.load %arg1[%c15] : memref<48xf32, #tpu.memory_space<smem>>
    %192 = vector.broadcast %191 : f32 to vector<16x16xf32>
    %193 = arith.mulf %192, %3 : vector<16x16xf32>
    %c16 = arith.constant 16 : index
    %194 = memref.load %arg1[%c16] : memref<48xf32, #tpu.memory_space<smem>>
    %195 = vector.broadcast %194 : f32 to vector<16x16xf32>
    %196 = arith.mulf %195, %5 : vector<16x16xf32>
    %197 = arith.addf %193, %196 : vector<16x16xf32>
    %c17 = arith.constant 17 : index
    %198 = memref.load %arg1[%c17] : memref<48xf32, #tpu.memory_space<smem>>
    %199 = vector.broadcast %198 : f32 to vector<16x16xf32>
    %200 = arith.mulf %199, %7 : vector<16x16xf32>
    %201 = arith.addf %197, %200 : vector<16x16xf32>
    %202 = vector.extract_strided_slice %14 {offsets = [0, 645], sizes = [16, 1], strides = [1, 1]} : vector<16x896xf32> to vector<16x1xf32>
    %203 = vector.broadcast %202 : vector<16x1xf32> to vector<16x16xf32>
    %204 = arith.mulf %20, %203 : vector<16x16xf32>
    %cst_48 = arith.constant dense<0.000000e+00> : vector<16xf32>
    %205 = vector.multi_reduction <add>, %204, %cst_48 [0] : vector<16x16xf32> to vector<16xf32>
    %206 = vector.shape_cast %205 : vector<16xf32> to vector<1x16xf32>
    %207 = vector.extract_strided_slice %14 {offsets = [0, 773], sizes = [16, 1], strides = [1, 1]} : vector<16x896xf32> to vector<16x1xf32>
    %208 = vector.broadcast %206 : vector<1x16xf32> to vector<16x16xf32>
    %209 = vector.broadcast %207 : vector<16x1xf32> to vector<16x16xf32>
    %210 = arith.addf %208, %209 : vector<16x16xf32>
    %211 = arith.addf %210, %201 : vector<16x16xf32>
    %cst_49 = arith.constant 0.000000e+00 : f32
    %212 = vector.broadcast %cst_49 : f32 to vector<16x16xf32>
    %213 = arith.cmpf ogt, %211, %212 : vector<16x16xf32>
    %cst_50 = arith.constant 0.00999999977 : f32
    %214 = vector.broadcast %cst_50 : f32 to vector<16x16xf32>
    %215 = arith.mulf %214, %211 : vector<16x16xf32>
    %216 = arith.select %213, %211, %215 : vector<16x16xi1>, vector<16x16xf32>
    %c41 = arith.constant 41 : index
    %217 = memref.load %arg1[%c41] : memref<48xf32, #tpu.memory_space<smem>>
    %218 = vector.broadcast %217 : f32 to vector<16x16xf32>
    %219 = arith.mulf %218, %216 : vector<16x16xf32>
    %220 = arith.addf %190, %219 : vector<16x16xf32>
    %cst_51 = arith.constant -1.000000e+30 : f32
    %221 = vector.broadcast %cst_51 : f32 to vector<16x16xf32>
    %222 = arith.select %22, %220, %221 : vector<16x16xi1>, vector<16x16xf32>
    %cst_52 = arith.constant dense<0xFF800000> : vector<16xf32>
    %223 = vector.multi_reduction <maximumf>, %222, %cst_52 [1] : vector<16x16xf32> to vector<16xf32>
    %224 = vector.shape_cast %223 : vector<16xf32> to vector<16x1xf32>
    %225 = vector.broadcast %224 : vector<16x1xf32> to vector<16x16xf32>
    %226 = arith.subf %222, %225 : vector<16x16xf32>
    %227 = math.exp %226 : vector<16x16xf32>
    %cst_53 = arith.constant 0.000000e+00 : f32
    %228 = vector.broadcast %cst_53 : f32 to vector<16x16xf32>
    %229 = arith.select %22, %227, %228 : vector<16x16xi1>, vector<16x16xf32>
    %cst_54 = arith.constant dense<0.000000e+00> : vector<16xf32>
    %230 = vector.multi_reduction <add>, %229, %cst_54 [1] : vector<16x16xf32> to vector<16xf32>
    %231 = vector.shape_cast %230 : vector<16xf32> to vector<16x1xf32>
    %cst_55 = arith.constant 0.000000e+00 : f32
    %232 = vector.broadcast %cst_55 : f32 to vector<16x1xf32>
    %233 = arith.cmpf ogt, %231, %232 : vector<16x1xf32>
    %234 = tpu.reciprocal %231 {approx = true} : vector<16x1xf32> -> vector<16x1xf32>
    %cst_56 = arith.constant 0.000000e+00 : f32
    %235 = vector.broadcast %cst_56 : f32 to vector<16x1xf32>
    %236 = arith.select %233, %234, %235 : vector<16x1xi1>, vector<16x1xf32>
    %237 = vector.broadcast %236 : vector<16x1xf32> to vector<16x16xf32>
    %238 = arith.mulf %229, %237 : vector<16x16xf32>
    %239 = vector.extract_strided_slice %14 {offsets = [0, 128], sizes = [16, 64], strides = [1, 1]} : vector<16x896xf32> to vector<16x64xf32>
    %cst_57 = arith.constant dense<0.000000e+00> : vector<16x64xf32>
    %240 = tpu.matmul %238, %239, %cst_57 {dimension_numbers = #tpu.dot_dimension_numbers<[1], [0], [0], [1], [0, 0, 1, 1], [], []>} : vector<16x16xf32>, vector<16x64xf32>, vector<16x64xf32> -> vector<16x64xf32>
    %241 = arith.maximumf %131, %240 : vector<16x64xf32>
    %c18 = arith.constant 18 : index
    %242 = memref.load %arg1[%c18] : memref<48xf32, #tpu.memory_space<smem>>
    %243 = vector.broadcast %242 : f32 to vector<16x16xf32>
    %244 = arith.mulf %243, %3 : vector<16x16xf32>
    %c19 = arith.constant 19 : index
    %245 = memref.load %arg1[%c19] : memref<48xf32, #tpu.memory_space<smem>>
    %246 = vector.broadcast %245 : f32 to vector<16x16xf32>
    %247 = arith.mulf %246, %5 : vector<16x16xf32>
    %248 = arith.addf %244, %247 : vector<16x16xf32>
    %c20 = arith.constant 20 : index
    %249 = memref.load %arg1[%c20] : memref<48xf32, #tpu.memory_space<smem>>
    %250 = vector.broadcast %249 : f32 to vector<16x16xf32>
    %251 = arith.mulf %250, %7 : vector<16x16xf32>
    %252 = arith.addf %248, %251 : vector<16x16xf32>
    %253 = vector.extract_strided_slice %14 {offsets = [0, 646], sizes = [16, 1], strides = [1, 1]} : vector<16x896xf32> to vector<16x1xf32>
    %254 = vector.broadcast %253 : vector<16x1xf32> to vector<16x16xf32>
    %255 = arith.mulf %20, %254 : vector<16x16xf32>
    %cst_58 = arith.constant dense<0.000000e+00> : vector<16xf32>
    %256 = vector.multi_reduction <add>, %255, %cst_58 [0] : vector<16x16xf32> to vector<16xf32>
    %257 = vector.shape_cast %256 : vector<16xf32> to vector<1x16xf32>
    %258 = vector.extract_strided_slice %14 {offsets = [0, 774], sizes = [16, 1], strides = [1, 1]} : vector<16x896xf32> to vector<16x1xf32>
    %259 = vector.broadcast %257 : vector<1x16xf32> to vector<16x16xf32>
    %260 = vector.broadcast %258 : vector<16x1xf32> to vector<16x16xf32>
    %261 = arith.addf %259, %260 : vector<16x16xf32>
    %262 = arith.addf %261, %252 : vector<16x16xf32>
    %cst_59 = arith.constant 0.000000e+00 : f32
    %263 = vector.broadcast %cst_59 : f32 to vector<16x16xf32>
    %264 = arith.cmpf ogt, %262, %263 : vector<16x16xf32>
    %cst_60 = arith.constant 0.00999999977 : f32
    %265 = vector.broadcast %cst_60 : f32 to vector<16x16xf32>
    %266 = arith.mulf %265, %262 : vector<16x16xf32>
    %267 = arith.select %264, %262, %266 : vector<16x16xi1>, vector<16x16xf32>
    %c42 = arith.constant 42 : index
    %268 = memref.load %arg1[%c42] : memref<48xf32, #tpu.memory_space<smem>>
    %269 = vector.broadcast %268 : f32 to vector<16x16xf32>
    %270 = arith.mulf %269, %267 : vector<16x16xf32>
    %c21 = arith.constant 21 : index
    %271 = memref.load %arg1[%c21] : memref<48xf32, #tpu.memory_space<smem>>
    %272 = vector.broadcast %271 : f32 to vector<16x16xf32>
    %273 = arith.mulf %272, %3 : vector<16x16xf32>
    %c22 = arith.constant 22 : index
    %274 = memref.load %arg1[%c22] : memref<48xf32, #tpu.memory_space<smem>>
    %275 = vector.broadcast %274 : f32 to vector<16x16xf32>
    %276 = arith.mulf %275, %5 : vector<16x16xf32>
    %277 = arith.addf %273, %276 : vector<16x16xf32>
    %c23 = arith.constant 23 : index
    %278 = memref.load %arg1[%c23] : memref<48xf32, #tpu.memory_space<smem>>
    %279 = vector.broadcast %278 : f32 to vector<16x16xf32>
    %280 = arith.mulf %279, %7 : vector<16x16xf32>
    %281 = arith.addf %277, %280 : vector<16x16xf32>
    %282 = vector.extract_strided_slice %14 {offsets = [0, 647], sizes = [16, 1], strides = [1, 1]} : vector<16x896xf32> to vector<16x1xf32>
    %283 = vector.broadcast %282 : vector<16x1xf32> to vector<16x16xf32>
    %284 = arith.mulf %20, %283 : vector<16x16xf32>
    %cst_61 = arith.constant dense<0.000000e+00> : vector<16xf32>
    %285 = vector.multi_reduction <add>, %284, %cst_61 [0] : vector<16x16xf32> to vector<16xf32>
    %286 = vector.shape_cast %285 : vector<16xf32> to vector<1x16xf32>
    %287 = vector.extract_strided_slice %14 {offsets = [0, 775], sizes = [16, 1], strides = [1, 1]} : vector<16x896xf32> to vector<16x1xf32>
    %288 = vector.broadcast %286 : vector<1x16xf32> to vector<16x16xf32>
    %289 = vector.broadcast %287 : vector<16x1xf32> to vector<16x16xf32>
    %290 = arith.addf %288, %289 : vector<16x16xf32>
    %291 = arith.addf %290, %281 : vector<16x16xf32>
    %cst_62 = arith.constant 0.000000e+00 : f32
    %292 = vector.broadcast %cst_62 : f32 to vector<16x16xf32>
    %293 = arith.cmpf ogt, %291, %292 : vector<16x16xf32>
    %cst_63 = arith.constant 0.00999999977 : f32
    %294 = vector.broadcast %cst_63 : f32 to vector<16x16xf32>
    %295 = arith.mulf %294, %291 : vector<16x16xf32>
    %296 = arith.select %293, %291, %295 : vector<16x16xi1>, vector<16x16xf32>
    %c43 = arith.constant 43 : index
    %297 = memref.load %arg1[%c43] : memref<48xf32, #tpu.memory_space<smem>>
    %298 = vector.broadcast %297 : f32 to vector<16x16xf32>
    %299 = arith.mulf %298, %296 : vector<16x16xf32>
    %300 = arith.addf %270, %299 : vector<16x16xf32>
    %c24 = arith.constant 24 : index
    %301 = memref.load %arg1[%c24] : memref<48xf32, #tpu.memory_space<smem>>
    %302 = vector.broadcast %301 : f32 to vector<16x16xf32>
    %303 = arith.mulf %302, %3 : vector<16x16xf32>
    %c25 = arith.constant 25 : index
    %304 = memref.load %arg1[%c25] : memref<48xf32, #tpu.memory_space<smem>>
    %305 = vector.broadcast %304 : f32 to vector<16x16xf32>
    %306 = arith.mulf %305, %5 : vector<16x16xf32>
    %307 = arith.addf %303, %306 : vector<16x16xf32>
    %c26 = arith.constant 26 : index
    %308 = memref.load %arg1[%c26] : memref<48xf32, #tpu.memory_space<smem>>
    %309 = vector.broadcast %308 : f32 to vector<16x16xf32>
    %310 = arith.mulf %309, %7 : vector<16x16xf32>
    %311 = arith.addf %307, %310 : vector<16x16xf32>
    %312 = vector.extract_strided_slice %14 {offsets = [0, 648], sizes = [16, 1], strides = [1, 1]} : vector<16x896xf32> to vector<16x1xf32>
    %313 = vector.broadcast %312 : vector<16x1xf32> to vector<16x16xf32>
    %314 = arith.mulf %20, %313 : vector<16x16xf32>
    %cst_64 = arith.constant dense<0.000000e+00> : vector<16xf32>
    %315 = vector.multi_reduction <add>, %314, %cst_64 [0] : vector<16x16xf32> to vector<16xf32>
    %316 = vector.shape_cast %315 : vector<16xf32> to vector<1x16xf32>
    %317 = vector.extract_strided_slice %14 {offsets = [0, 776], sizes = [16, 1], strides = [1, 1]} : vector<16x896xf32> to vector<16x1xf32>
    %318 = vector.broadcast %316 : vector<1x16xf32> to vector<16x16xf32>
    %319 = vector.broadcast %317 : vector<16x1xf32> to vector<16x16xf32>
    %320 = arith.addf %318, %319 : vector<16x16xf32>
    %321 = arith.addf %320, %311 : vector<16x16xf32>
    %cst_65 = arith.constant 0.000000e+00 : f32
    %322 = vector.broadcast %cst_65 : f32 to vector<16x16xf32>
    %323 = arith.cmpf ogt, %321, %322 : vector<16x16xf32>
    %cst_66 = arith.constant 0.00999999977 : f32
    %324 = vector.broadcast %cst_66 : f32 to vector<16x16xf32>
    %325 = arith.mulf %324, %321 : vector<16x16xf32>
    %326 = arith.select %323, %321, %325 : vector<16x16xi1>, vector<16x16xf32>
    %c44 = arith.constant 44 : index
    %327 = memref.load %arg1[%c44] : memref<48xf32, #tpu.memory_space<smem>>
    %328 = vector.broadcast %327 : f32 to vector<16x16xf32>
    %329 = arith.mulf %328, %326 : vector<16x16xf32>
    %330 = arith.addf %300, %329 : vector<16x16xf32>
    %cst_67 = arith.constant -1.000000e+30 : f32
    %331 = vector.broadcast %cst_67 : f32 to vector<16x16xf32>
    %332 = arith.select %22, %330, %331 : vector<16x16xi1>, vector<16x16xf32>
    %cst_68 = arith.constant dense<0xFF800000> : vector<16xf32>
    %333 = vector.multi_reduction <maximumf>, %332, %cst_68 [1] : vector<16x16xf32> to vector<16xf32>
    %334 = vector.shape_cast %333 : vector<16xf32> to vector<16x1xf32>
    %335 = vector.broadcast %334 : vector<16x1xf32> to vector<16x16xf32>
    %336 = arith.subf %332, %335 : vector<16x16xf32>
    %337 = math.exp %336 : vector<16x16xf32>
    %cst_69 = arith.constant 0.000000e+00 : f32
    %338 = vector.broadcast %cst_69 : f32 to vector<16x16xf32>
    %339 = arith.select %22, %337, %338 : vector<16x16xi1>, vector<16x16xf32>
    %cst_70 = arith.constant dense<0.000000e+00> : vector<16xf32>
    %340 = vector.multi_reduction <add>, %339, %cst_70 [1] : vector<16x16xf32> to vector<16xf32>
    %341 = vector.shape_cast %340 : vector<16xf32> to vector<16x1xf32>
    %cst_71 = arith.constant 0.000000e+00 : f32
    %342 = vector.broadcast %cst_71 : f32 to vector<16x1xf32>
    %343 = arith.cmpf ogt, %341, %342 : vector<16x1xf32>
    %344 = tpu.reciprocal %341 {approx = true} : vector<16x1xf32> -> vector<16x1xf32>
    %cst_72 = arith.constant 0.000000e+00 : f32
    %345 = vector.broadcast %cst_72 : f32 to vector<16x1xf32>
    %346 = arith.select %343, %344, %345 : vector<16x1xi1>, vector<16x1xf32>
    %347 = vector.broadcast %346 : vector<16x1xf32> to vector<16x16xf32>
    %348 = arith.mulf %339, %347 : vector<16x16xf32>
    %349 = vector.extract_strided_slice %14 {offsets = [0, 256], sizes = [16, 64], strides = [1, 1]} : vector<16x896xf32> to vector<16x64xf32>
    %cst_73 = arith.constant dense<0.000000e+00> : vector<16x64xf32>
    %350 = tpu.matmul %348, %349, %cst_73 {dimension_numbers = #tpu.dot_dimension_numbers<[1], [0], [0], [1], [0, 0, 1, 1], [], []>} : vector<16x16xf32>, vector<16x64xf32>, vector<16x64xf32> -> vector<16x64xf32>
    %351 = arith.maximumf %241, %350 : vector<16x64xf32>
    %c27 = arith.constant 27 : index
    %352 = memref.load %arg1[%c27] : memref<48xf32, #tpu.memory_space<smem>>
    %353 = vector.broadcast %352 : f32 to vector<16x16xf32>
    %354 = arith.mulf %353, %3 : vector<16x16xf32>
    %c28 = arith.constant 28 : index
    %355 = memref.load %arg1[%c28] : memref<48xf32, #tpu.memory_space<smem>>
    %356 = vector.broadcast %355 : f32 to vector<16x16xf32>
    %357 = arith.mulf %356, %5 : vector<16x16xf32>
    %358 = arith.addf %354, %357 : vector<16x16xf32>
    %c29 = arith.constant 29 : index
    %359 = memref.load %arg1[%c29] : memref<48xf32, #tpu.memory_space<smem>>
    %360 = vector.broadcast %359 : f32 to vector<16x16xf32>
    %361 = arith.mulf %360, %7 : vector<16x16xf32>
    %362 = arith.addf %358, %361 : vector<16x16xf32>
    %363 = vector.extract_strided_slice %14 {offsets = [0, 649], sizes = [16, 1], strides = [1, 1]} : vector<16x896xf32> to vector<16x1xf32>
    %364 = vector.broadcast %363 : vector<16x1xf32> to vector<16x16xf32>
    %365 = arith.mulf %20, %364 : vector<16x16xf32>
    %cst_74 = arith.constant dense<0.000000e+00> : vector<16xf32>
    %366 = vector.multi_reduction <add>, %365, %cst_74 [0] : vector<16x16xf32> to vector<16xf32>
    %367 = vector.shape_cast %366 : vector<16xf32> to vector<1x16xf32>
    %368 = vector.extract_strided_slice %14 {offsets = [0, 777], sizes = [16, 1], strides = [1, 1]} : vector<16x896xf32> to vector<16x1xf32>
    %369 = vector.broadcast %367 : vector<1x16xf32> to vector<16x16xf32>
    %370 = vector.broadcast %368 : vector<16x1xf32> to vector<16x16xf32>
    %371 = arith.addf %369, %370 : vector<16x16xf32>
    %372 = arith.addf %371, %362 : vector<16x16xf32>
    %cst_75 = arith.constant 0.000000e+00 : f32
    %373 = vector.broadcast %cst_75 : f32 to vector<16x16xf32>
    %374 = arith.cmpf ogt, %372, %373 : vector<16x16xf32>
    %cst_76 = arith.constant 0.00999999977 : f32
    %375 = vector.broadcast %cst_76 : f32 to vector<16x16xf32>
    %376 = arith.mulf %375, %372 : vector<16x16xf32>
    %377 = arith.select %374, %372, %376 : vector<16x16xi1>, vector<16x16xf32>
    %c45 = arith.constant 45 : index
    %378 = memref.load %arg1[%c45] : memref<48xf32, #tpu.memory_space<smem>>
    %379 = vector.broadcast %378 : f32 to vector<16x16xf32>
    %380 = arith.mulf %379, %377 : vector<16x16xf32>
    %c30 = arith.constant 30 : index
    %381 = memref.load %arg1[%c30] : memref<48xf32, #tpu.memory_space<smem>>
    %382 = vector.broadcast %381 : f32 to vector<16x16xf32>
    %383 = arith.mulf %382, %3 : vector<16x16xf32>
    %c31 = arith.constant 31 : index
    %384 = memref.load %arg1[%c31] : memref<48xf32, #tpu.memory_space<smem>>
    %385 = vector.broadcast %384 : f32 to vector<16x16xf32>
    %386 = arith.mulf %385, %5 : vector<16x16xf32>
    %387 = arith.addf %383, %386 : vector<16x16xf32>
    %c32 = arith.constant 32 : index
    %388 = memref.load %arg1[%c32] : memref<48xf32, #tpu.memory_space<smem>>
    %389 = vector.broadcast %388 : f32 to vector<16x16xf32>
    %390 = arith.mulf %389, %7 : vector<16x16xf32>
    %391 = arith.addf %387, %390 : vector<16x16xf32>
    %392 = vector.extract_strided_slice %14 {offsets = [0, 650], sizes = [16, 1], strides = [1, 1]} : vector<16x896xf32> to vector<16x1xf32>
    %393 = vector.broadcast %392 : vector<16x1xf32> to vector<16x16xf32>
    %394 = arith.mulf %20, %393 : vector<16x16xf32>
    %cst_77 = arith.constant dense<0.000000e+00> : vector<16xf32>
    %395 = vector.multi_reduction <add>, %394, %cst_77 [0] : vector<16x16xf32> to vector<16xf32>
    %396 = vector.shape_cast %395 : vector<16xf32> to vector<1x16xf32>
    %397 = vector.extract_strided_slice %14 {offsets = [0, 778], sizes = [16, 1], strides = [1, 1]} : vector<16x896xf32> to vector<16x1xf32>
    %398 = vector.broadcast %396 : vector<1x16xf32> to vector<16x16xf32>
    %399 = vector.broadcast %397 : vector<16x1xf32> to vector<16x16xf32>
    %400 = arith.addf %398, %399 : vector<16x16xf32>
    %401 = arith.addf %400, %391 : vector<16x16xf32>
    %cst_78 = arith.constant 0.000000e+00 : f32
    %402 = vector.broadcast %cst_78 : f32 to vector<16x16xf32>
    %403 = arith.cmpf ogt, %401, %402 : vector<16x16xf32>
    %cst_79 = arith.constant 0.00999999977 : f32
    %404 = vector.broadcast %cst_79 : f32 to vector<16x16xf32>
    %405 = arith.mulf %404, %401 : vector<16x16xf32>
    %406 = arith.select %403, %401, %405 : vector<16x16xi1>, vector<16x16xf32>
    %c46 = arith.constant 46 : index
    %407 = memref.load %arg1[%c46] : memref<48xf32, #tpu.memory_space<smem>>
    %408 = vector.broadcast %407 : f32 to vector<16x16xf32>
    %409 = arith.mulf %408, %406 : vector<16x16xf32>
    %410 = arith.addf %380, %409 : vector<16x16xf32>
    %c33 = arith.constant 33 : index
    %411 = memref.load %arg1[%c33] : memref<48xf32, #tpu.memory_space<smem>>
    %412 = vector.broadcast %411 : f32 to vector<16x16xf32>
    %413 = arith.mulf %412, %3 : vector<16x16xf32>
    %c34 = arith.constant 34 : index
    %414 = memref.load %arg1[%c34] : memref<48xf32, #tpu.memory_space<smem>>
    %415 = vector.broadcast %414 : f32 to vector<16x16xf32>
    %416 = arith.mulf %415, %5 : vector<16x16xf32>
    %417 = arith.addf %413, %416 : vector<16x16xf32>
    %c35 = arith.constant 35 : index
    %418 = memref.load %arg1[%c35] : memref<48xf32, #tpu.memory_space<smem>>
    %419 = vector.broadcast %418 : f32 to vector<16x16xf32>
    %420 = arith.mulf %419, %7 : vector<16x16xf32>
    %421 = arith.addf %417, %420 : vector<16x16xf32>
    %422 = vector.extract_strided_slice %14 {offsets = [0, 651], sizes = [16, 1], strides = [1, 1]} : vector<16x896xf32> to vector<16x1xf32>
    %423 = vector.broadcast %422 : vector<16x1xf32> to vector<16x16xf32>
    %424 = arith.mulf %20, %423 : vector<16x16xf32>
    %cst_80 = arith.constant dense<0.000000e+00> : vector<16xf32>
    %425 = vector.multi_reduction <add>, %424, %cst_80 [0] : vector<16x16xf32> to vector<16xf32>
    %426 = vector.shape_cast %425 : vector<16xf32> to vector<1x16xf32>
    %427 = vector.extract_strided_slice %14 {offsets = [0, 779], sizes = [16, 1], strides = [1, 1]} : vector<16x896xf32> to vector<16x1xf32>
    %428 = vector.broadcast %426 : vector<1x16xf32> to vector<16x16xf32>
    %429 = vector.broadcast %427 : vector<16x1xf32> to vector<16x16xf32>
    %430 = arith.addf %428, %429 : vector<16x16xf32>
    %431 = arith.addf %430, %421 : vector<16x16xf32>
    %cst_81 = arith.constant 0.000000e+00 : f32
    %432 = vector.broadcast %cst_81 : f32 to vector<16x16xf32>
    %433 = arith.cmpf ogt, %431, %432 : vector<16x16xf32>
    %cst_82 = arith.constant 0.00999999977 : f32
    %434 = vector.broadcast %cst_82 : f32 to vector<16x16xf32>
    %435 = arith.mulf %434, %431 : vector<16x16xf32>
    %436 = arith.select %433, %431, %435 : vector<16x16xi1>, vector<16x16xf32>
    %c47 = arith.constant 47 : index
    %437 = memref.load %arg1[%c47] : memref<48xf32, #tpu.memory_space<smem>>
    %438 = vector.broadcast %437 : f32 to vector<16x16xf32>
    %439 = arith.mulf %438, %436 : vector<16x16xf32>
    %440 = arith.addf %410, %439 : vector<16x16xf32>
    %cst_83 = arith.constant -1.000000e+30 : f32
    %441 = vector.broadcast %cst_83 : f32 to vector<16x16xf32>
    %442 = arith.select %22, %440, %441 : vector<16x16xi1>, vector<16x16xf32>
    %cst_84 = arith.constant dense<0xFF800000> : vector<16xf32>
    %443 = vector.multi_reduction <maximumf>, %442, %cst_84 [1] : vector<16x16xf32> to vector<16xf32>
    %444 = vector.shape_cast %443 : vector<16xf32> to vector<16x1xf32>
    %445 = vector.broadcast %444 : vector<16x1xf32> to vector<16x16xf32>
    %446 = arith.subf %442, %445 : vector<16x16xf32>
    %447 = math.exp %446 : vector<16x16xf32>
    %cst_85 = arith.constant 0.000000e+00 : f32
    %448 = vector.broadcast %cst_85 : f32 to vector<16x16xf32>
    %449 = arith.select %22, %447, %448 : vector<16x16xi1>, vector<16x16xf32>
    %cst_86 = arith.constant dense<0.000000e+00> : vector<16xf32>
    %450 = vector.multi_reduction <add>, %449, %cst_86 [1] : vector<16x16xf32> to vector<16xf32>
    %451 = vector.shape_cast %450 : vector<16xf32> to vector<16x1xf32>
    %cst_87 = arith.constant 0.000000e+00 : f32
    %452 = vector.broadcast %cst_87 : f32 to vector<16x1xf32>
    %453 = arith.cmpf ogt, %451, %452 : vector<16x1xf32>
    %454 = tpu.reciprocal %451 {approx = true} : vector<16x1xf32> -> vector<16x1xf32>
    %cst_88 = arith.constant 0.000000e+00 : f32
    %455 = vector.broadcast %cst_88 : f32 to vector<16x1xf32>
    %456 = arith.select %453, %454, %455 : vector<16x1xi1>, vector<16x1xf32>
    %457 = vector.broadcast %456 : vector<16x1xf32> to vector<16x16xf32>
    %458 = arith.mulf %449, %457 : vector<16x16xf32>
    %459 = vector.extract_strided_slice %14 {offsets = [0, 384], sizes = [16, 64], strides = [1, 1]} : vector<16x896xf32> to vector<16x64xf32>
    %cst_89 = arith.constant dense<0.000000e+00> : vector<16x64xf32>
    %460 = tpu.matmul %458, %459, %cst_89 {dimension_numbers = #tpu.dot_dimension_numbers<[1], [0], [0], [1], [0, 0, 1, 1], [], []>} : vector<16x16xf32>, vector<16x64xf32>, vector<16x64xf32> -> vector<16x64xf32>
    %461 = arith.maximumf %351, %460 : vector<16x64xf32>
    %cst_90 = arith.constant 0.000000e+00 : f32
    %462 = vector.broadcast %cst_90 : f32 to vector<16x64xf32>
    %463 = arith.maximumf %461, %462 : vector<16x64xf32>
    %464 = arith.addf %9, %20 : vector<16x16xf32>
    %cst_91 = arith.constant dense<0.000000e+00> : vector<16xf32>
    %465 = vector.multi_reduction <add>, %464, %cst_91 [1] : vector<16x16xf32> to vector<16xf32>
    %466 = vector.shape_cast %465 : vector<16xf32> to vector<16x1xf32>
    %467 = math.rsqrt %466 : vector<16x1xf32>
    %468 = vector.broadcast %467 : vector<16x1xf32> to vector<16x16xf32>
    %469 = arith.mulf %20, %468 : vector<16x16xf32>
    %cst_92 = arith.constant dense<0.000000e+00> : vector<16xf32>
    %470 = vector.multi_reduction <add>, %469, %cst_92 [0] : vector<16x16xf32> to vector<16xf32>
    %471 = vector.shape_cast %470 : vector<16xf32> to vector<1x16xf32>
    %472 = vector.broadcast %467 : vector<16x1xf32> to vector<16x16xf32>
    %473 = arith.mulf %464, %472 : vector<16x16xf32>
    %474 = vector.broadcast %471 : vector<1x16xf32> to vector<16x16xf32>
    %475 = arith.mulf %473, %474 : vector<16x16xf32>
    %c0_93 = arith.constant 0 : index
    %c0_94 = arith.constant 0 : index
    %476 = vector.load %arg5[%c0_93, %c0_94] : memref<72x256xf32, #tpu.memory_space<vmem>>, vector<64x64xf32>
    %c64 = arith.constant 64 : index
    %c0_95 = arith.constant 0 : index
    %477 = vector.load %arg5[%c64, %c0_95] : memref<72x256xf32, #tpu.memory_space<vmem>>, vector<1x64xf32>
    %cst_96 = arith.constant dense<0.000000e+00> : vector<16x64xf32>
    %478 = tpu.matmul %463, %476, %cst_96 {dimension_numbers = #tpu.dot_dimension_numbers<[1], [0], [0], [1], [0, 0, 1, 1], [], []>} : vector<16x64xf32>, vector<64x64xf32>, vector<16x64xf32> -> vector<16x64xf32>
    %cst_97 = arith.constant dense<0.000000e+00> : vector<16x64xf32>
    %479 = tpu.matmul %475, %478, %cst_97 {dimension_numbers = #tpu.dot_dimension_numbers<[1], [0], [0], [1], [0, 0, 1, 1], [], []>} : vector<16x16xf32>, vector<16x64xf32>, vector<16x64xf32> -> vector<16x64xf32>
    %480 = vector.broadcast %477 : vector<1x64xf32> to vector<16x64xf32>
    %481 = arith.addf %479, %480 : vector<16x64xf32>
    %482 = vector.extract_strided_slice %14 {offsets = [0, 512], sizes = [16, 64], strides = [1, 1]} : vector<16x896xf32> to vector<16x64xf32>
    %483 = arith.addf %481, %482 : vector<16x64xf32>
    %c0_98 = arith.constant 0 : index
    %c128 = arith.constant 128 : index
    %484 = vector.load %arg5[%c0_98, %c128] : memref<72x256xf32, #tpu.memory_space<vmem>>, vector<64x128xf32>
    %c65 = arith.constant 65 : index
    %c128_99 = arith.constant 128 : index
    %485 = vector.load %arg5[%c65, %c128_99] : memref<72x256xf32, #tpu.memory_space<vmem>>, vector<1x128xf32>
    %cst_100 = arith.constant dense<0.000000e+00> : vector<16x128xf32>
    %486 = tpu.matmul %483, %484, %cst_100 {dimension_numbers = #tpu.dot_dimension_numbers<[1], [0], [0], [1], [0, 0, 1, 1], [], []>} : vector<16x64xf32>, vector<64x128xf32>, vector<16x128xf32> -> vector<16x128xf32>
    %487 = vector.broadcast %485 : vector<1x128xf32> to vector<16x128xf32>
    %488 = arith.addf %486, %487 : vector<16x128xf32>
    %489 = tpu.iota {dimensions = array<i32: 1>} : vector<16x128xi32>
    %c7_i32 = arith.constant 7 : i32
    %490 = vector.broadcast %c7_i32 : i32 to vector<16x128xi32>
    %491 = arith.cmpi slt, %489, %490 : vector<16x128xi32>
    %cst_101 = arith.constant -1.000000e+30 : f32
    %492 = vector.broadcast %cst_101 : f32 to vector<16x128xf32>
    %493 = arith.select %491, %488, %492 : vector<16x128xi1>, vector<16x128xf32>
    %cst_102 = arith.constant dense<0xFF800000> : vector<16xf32>
    %494 = vector.multi_reduction <maximumf>, %493, %cst_102 [1] : vector<16x128xf32> to vector<16xf32>
    %495 = vector.shape_cast %494 : vector<16xf32> to vector<16x1xf32>
    %496 = vector.broadcast %495 : vector<16x1xf32> to vector<16x128xf32>
    %497 = arith.subf %493, %496 : vector<16x128xf32>
    %498 = math.exp %497 : vector<16x128xf32>
    %cst_103 = arith.constant 0.000000e+00 : f32
    %499 = vector.broadcast %cst_103 : f32 to vector<16x128xf32>
    %500 = arith.select %491, %498, %499 : vector<16x128xi1>, vector<16x128xf32>
    %cst_104 = arith.constant dense<0.000000e+00> : vector<16xf32>
    %501 = vector.multi_reduction <add>, %500, %cst_104 [1] : vector<16x128xf32> to vector<16xf32>
    %502 = vector.shape_cast %501 : vector<16xf32> to vector<16x1xf32>
    %503 = math.log %502 : vector<16x1xf32>
    %504 = vector.broadcast %495 : vector<16x1xf32> to vector<16x128xf32>
    %505 = arith.subf %493, %504 : vector<16x128xf32>
    %506 = vector.broadcast %503 : vector<16x1xf32> to vector<16x128xf32>
    %507 = arith.subf %505, %506 : vector<16x128xf32>
    %cst_105 = arith.constant 0.000000e+00 : f32
    %508 = vector.broadcast %cst_105 : f32 to vector<16x128xf32>
    %509 = arith.select %491, %507, %508 : vector<16x128xi1>, vector<16x128xf32>
    %c0_106 = arith.constant 0 : index
    %c0_107 = arith.constant 0 : index
    %c0_108 = arith.constant 0 : index
    %510 = vector.load %arg6[%c0_106, %c0_107, %c0_108] : memref<1x16x128xf32, #tpu.memory_space<vmem>>, vector<1x16x128xf32>
    %511 = vector.shape_cast %510 : vector<1x16x128xf32> to vector<16x128xf32>
    %512 = vector.shape_cast %509 : vector<16x128xf32> to vector<1x16x128xf32>
    tpu.vector_store %arg6[%c0_106, %c0_107, %c0_108], %512 {strides = array<i32>} : memref<1x16x128xf32, #tpu.memory_space<vmem>>, vector<1x16x128xf32>,
    return
  }
  func.func @transform_0(%arg0: i32, %arg1: memref<48xf32, #tpu.memory_space<smem>>) -> (i32, i32, i32) {
    %c0_i32 = arith.constant 0 : i32
    %c0_i32_0 = arith.constant 0 : i32
    %c0_i32_1 = arith.constant 0 : i32
    return %arg0, %c0_i32, %c0_i32_0 : i32, i32, i32
  }
  func.func @transform_1(%arg0: i32, %arg1: memref<48xf32, #tpu.memory_space<smem>>) -> (i32, i32, i32, i32) {
    %c0_i32 = arith.constant 0 : i32
    %c0_i32_0 = arith.constant 0 : i32
    %c0_i32_1 = arith.constant 0 : i32
    %c0_i32_2 = arith.constant 0 : i32
    return %arg0, %c0_i32, %c0_i32_0, %c0_i32_1 : i32, i32, i32, i32
  }
  func.func @transform_2(%arg0: i32, %arg1: memref<48xf32, #tpu.memory_space<smem>>) -> (i32, i32) {
    %c0_i32 = arith.constant 0 : i32
    %c0_i32_0 = arith.constant 0 : i32
    %c0_i32_1 = arith.constant 0 : i32
    return %c0_i32, %c0_i32_0 : i32, i32
  }
  func.func @transform_3(%arg0: i32, %arg1: memref<48xf32, #tpu.memory_space<smem>>) -> (i32, i32) {
    %c0_i32 = arith.constant 0 : i32
    %c0_i32_0 = arith.constant 0 : i32
    %c0_i32_1 = arith.constant 0 : i32
    return %c0_i32, %c0_i32_0 : i32, i32
  }
  func.func @transform_4(%arg0: i32, %arg1: memref<48xf32, #tpu.memory_space<smem>>) -> (i32, i32, i32) {
    %c0_i32 = arith.constant 0 : i32
    %c0_i32_0 = arith.constant 0 : i32
    %c0_i32_1 = arith.constant 0 : i32
    return %arg0, %c0_i32, %c0_i32_0 : i32, i32, i32
  }
}

</mosaic_0001>

<bundles_post_ra>
// kernel: rgat_forward.1
= control target key start
LH: loop header
LB: loop body
LE: loop exit
PB: predicated region body
PF: predicated region fallthrough
CT: control target
= control target key end

     0   :  { %s3572_s0 = inlined_call_operand.vmem [shape: f32[48], index: 0, kind: input, shape index: {}]   ;;  %s3573_s1 = inlined_call_operand.vmem [shape: f32[4,16,8], index: 1, kind: input, shape index: {}]   ;;  %s3574_s2 = inlined_call_operand.vmem [shape: f32[4,4,16,16], index: 2, kind: input, shape index: {}]   ;;  %s3575_s3 = inlined_call_operand.vmem [shape: f32[16,896], index: 3, kind: input, shape index: {}]   ;;  %s3576_s4 = inlined_call_operand.vmem [shape: f32[72,256], index: 4, kind: input, shape index: {}]   ;;  %s3577_s5 = inlined_call_operand.vmem [shape: f32[4,16,128], index: 5, kind: output, shape index: {}]  }
   0x1   :  { %3606 = sst [smem:[#allocation15_spill]] %s3573_s1  ;;  %s10_s20 = sshll.u32 %s3572_s0, 4  ;;  %s11_s20 = int_to_ptr.vmem [resolvable:$true] %s10_s20 }
   0x2   :  { %3607 = sst [smem:[#allocation16_spill]] %s3574_s2  ;;  %s2536_s21 = scalar_lea.vmem %s11_s20, 16 }
   0x3   :  { %3608 = sst [smem:[#allocation17_spill]] %s3575_s3  ;;  %p2537_p0 = scmp.ne.s32.totalorder %s11_s20, %s2536_s21 }
   0x4   :  { %3609 = sst [smem:[#allocation18_spill]] %s3576_s4  ;;  %p2541_p1 = scmp.lt.s32.totalorder %s11_s20, %s11_s20 }
   0x5   :  { %3610 = sst [smem:[#allocation19_spill]] %s3577_s5  ;;  %p2542_p2 = scmp.lt.s32.totalorder %s2536_s21, %s2536_s21 }
   0x7   :  { %p2543_p3 = por %p2542_p2, %p2541_p1 }
   0x9   :  { %p2544_p4 = pnand %p2543_p3, %p2537_p0 }
   0xb   :  { %2547 = shalt.err (!%p2544_p4)  }
   0xc   :  { %s2558_s22 = smov [#allocation3]  }
   0xd   :  { %13 = dma.vmem_to_smem %s11_s20, 16, %s2558_s22, [#allocation2] }
   0xe   :  { %2552 = dma.done.wait [#allocation2], 16 }
   0xf   :  { %2553 = vsyncadd [#allocation2], 4294967280 }
  0x10   :  { %15 = sfence }
  0x11   :  { %s2605_s23 = smov 0  }
  0x12 LB: > { %3611 = sst [smem:[#allocation5_spill]] %s2556_s23  ;;  %s2151_s0 = sadd.s32 4294967295, %s2556_s23   ;;  %s2556_s23 = sphi %s2605_s23, %s21_s23  }
  0x13   : > { %p2155_p5 = scmp.ge.s32.totalorder %s2556_s23, 1  ;;  %p179_p6 = scmp.lt.s32.totalorder %s2556_s23, 5 }
  0x15   : > { %p180_p7 = pnand %p2155_p5, %p179_p6 }
  0x17   : > { %183 = sbr.rel (%p180_p7) target bundleno = 2048 (0x800), region = 36 }
  0x1e   : > { %s3612_s3 = sld [smem:[#allocation17_spill]]  ;;  %p210_p8 = scmp.lt.s32.totalorder %s2151_s0, 3  ;;  %v2559_v4 = vmov 0.0   ;;  %vm285_vm0 = vcmask 64512   ;;  %v2560_v10 = vmov 1   ;;  %v2561_v11 = vmov 0  }
  0x1f   : > { %356 = vmatprep.mubr.f32.mxu0 %v2559_v4  ;;  %362 = vmatprep.mubr.f32.mxu1 %v2559_v4  ;;  %s3614_s1 = sld [smem:[#allocation15_spill]]  ;;  %v250_v12 = vlaneseq  ;;  %v2562_v51 = vmov 3   ;;  %v2563_v52 = vmov 2   ;;  %v2564_v56 = vmov 4   ;;  %s2753_s21 = sld [smem:[#allocation3 + $0x6]] }
  0x20   : > { %s3672_s0 = smov (!%p210_p8, %s2151_s0), 3  ;;  %2442 = vset.pattern.permute.xlu1 %v2560_v10  ;;  %2441 = vset.pattern.permute.xlu0 %v2561_v11  ;;  %v2565_v57 = vmov 5   ;;  %v2566_v58 = vmov 6   ;;  %v2567_v59 = vmov 8   ;;  %v2568_v60 = vmov 7   ;;  %s2755_s22 = sld [smem:[#allocation3 + $0x7]] }
  0x21   : > { %3613 = sst [smem:[#allocation6_spill]] %s3672_s0  ;;  %s3590_s7 = sshll.u32 %s3672_s0, 4  ;;  %v2659_v13 = vshrl.u32 %v250_v12, 7  ;;  %v2569_v61 = vmov 11   ;;  %v2570_v63 = vmov 9   ;;  %vm637_vm3 = vcmask 130048  }
  0x22   : > { %s2242_s24 = sshll.u32 %s3672_s0, 6  ;;  %s2758_s25 = sld [smem:[#allocation3 + $0xc]] }
  0x23   : > { %3615 = vst [vmem:[#allocation7_spill] sm:$0xff] %v2659_v13  ;;  %v252_v17 = vsub.s32 0, %v2659_v13  ;;  %v256_v18 = vsub.s32 1, %v2659_v13  ;;  %v272_v21 = vsub.s32 5, %v2659_v13  ;;  %v260_v22 = vsub.s32 2, %v2659_v13  ;;  %s2760_s26 = sld [smem:[#allocation3 + $0xd]] }
  0x24   : > { %v239_v0 = vld [vmem:[%s3612_s3 + $0x8] sm:$0xff]  ;;  %v238_v1 = vld [vmem:[%s3612_s3] sm:$0xff]  ;;  %v241_v3 = vld [vmem:[%s3612_s3 + $0x18] sm:$0xff]  ;;  %v264_v25 = vsub.s32 3, %v2659_v13  ;;  %s3620_s2 = sld [smem:[#allocation16_spill]]  ;;  %s2771_s30 = sld [smem:[#allocation3 + $0x8]] }
  0x25   : > { %292 = vmatprep.subr.mxu0 %v239_v0  ;;  %2417 = vmatprep.subr.mxu1 %v239_v0  ;;  %v243_v2 = vld [vmem:[%s3612_s3 + $0x28] sm:$0xff]  ;;  %s214_s10 = scalar_lea.vmem %s3614_s1, %s3590_s7  ;;  %v242_v5 = vld [vmem:[%s3612_s3 + $0x20] sm:$0xff]  ;;  %v240_v8 = vld [vmem:[%s3612_s3 + $0x10] sm:$0xff]  ;;  %v2571_v0 = vmov 10   ;;  %s2774_s6 = sld [smem:[#allocation3 + $0x1b]] }
  0x26   : > { %293 = vmatpush1.msra.mxu0 %v238_v1  ;;  %2418 = vmatpush1.msra.mxu1 %v238_v1  ;;  %v225_v6 = vld [vmem:[%s214_s10] sm:$0xff]  ;;  %v226_v7 = vld [vmem:[%s214_s10 + $0x8] sm:$0xff]  ;;  %v244_v9 = vld [vmem:[%s3612_s3 + $0x30] sm:$0xff]  ;;  %v276_v1 = vsub.s32 6, %v2659_v13  ;;  %s2776_s8 = sld [smem:[#allocation3 + $0x1c]]  ;;  %s2779_s9 = sld [smem:[#allocation3 + $0xe]] }
  0x27   : > { %446 = vmatprep.subr.mxu0 %v243_v2  ;;  %369 = vmatprep.subr.mxu1 %v241_v3  ;;  %v2168_v14 = vld [vmem:[%s3612_s3 + $0x38] ss:$8 sm:$0xf]  ;;  %s2793_s10 = sld [smem:[#allocation3 + $0x1d]]  ;;  %s2797_s11 = sld [smem:[#allocation3 + $0x3]] }
  0x28   : > { %2170 = vmatmul.mubr.msk.f32.vlgmr.msra.gmra.mrb[0].mxu0 %vm285_vm0, %v225_v6  ;;  %2171 = vmatmul.mubr.msk.f32.vlgmr.msra.gmra.mrb[0].mxu1 %vm285_vm0, %v226_v7  ;;  %v2169_v15 = vld [vmem:[%s3612_s3 + $0x38] ss:$8 sm:$0xf0]  ;;  %s2799_s12 = sld [smem:[#allocation3 + $0x4]]  ;;  %s2806_s13 = sld [smem:[#allocation3 + $0x15]] }
  0x29   : > { %447 = vmatpush1.msra.mxu0 %v242_v5  ;;  %510 = vmatprep.mubr.f32.mxu0 %v2559_v4  ;;  %v2667_v16 = vor.u32 %v2169_v15, %v2168_v14  ;;  %s2808_s14 = sld [smem:[#allocation3 + $0x16]]  ;;  %s2815_s15 = sld [smem:[#allocation3]] }
  0x2a   : > { %370 = vmatpush1.msra.mxu1 %v240_v8  ;;  %433 = vmatprep.mubr.f32.mxu1 %v2559_v4  ;;  %s2769_s29 = scalar_lea.vmem %s3620_s2, %s2242_s24  ;;  %s2817_s16 = sld [smem:[#allocation3 + $0x1]] }
  0x2b   : > { %2287 = vmatprep.subr.mxu1 %v244_v9  ;;  %3616 = vst [vmem:[#allocation8_spill] sm:$0xff] %v2667_v16  ;;  %v253_v19 = vrot.slane %v2667_v16, %v252_v17  ;;  %v257_v20 = vrot.slane %v2667_v16, %v256_v18  ;;  %v273_v32 = vrot.slane %v2667_v16, %v272_v21  ;;  %v731_v21 = vstv %s2753_s21  ;;  %s2831_s17 = sld [smem:[#allocation3 + $0x5]]  ;;  %s2839_s18 = sld [smem:[#allocation3 + $0x17]] }
  0x2c   : > { %2174 = vmatmul.mubr.msk.f32.vlgmr.msra.gmra.mrb[2].mxu0 %vm285_vm0, %v225_v6  ;;  %2172 = vmatmul.mubr.msk.f32.vlgmr.msra.gmra.mrb[2].mxu1 %vm285_vm0, %v225_v6  ;;  %v261_v34 = vrot.slane %v2667_v16, %v260_v22  ;;  %v265_v38 = vrot.slane %v2667_v16, %v264_v25  ;;  %v277_v2 = vrot.slane %v2667_v16, %v276_v1  ;;  %v735_v22 = vstv %s2755_s22  ;;  %s2841_s19 = sld [smem:[#allocation3 + $0x2]]  ;;  %s2865_s20 = sld [smem:[#allocation3 + $0x26]] }
  0x2d   : > { %516 = vmatprep.mubr.f32.mxu0 %v2559_v4  ;;  %439 = vmatprep.mubr.f32.mxu1 %v2559_v4  ;;  %v2802_v25 = vand.u32 127, %v250_v12  ;;  %s2891_s21 = sld [smem:[#allocation3 + $0x28]]  ;;  %s2905_s22 = sld [smem:[#allocation3 + $0x9]] }
  0x2e   : > { %2288 = vmatpush3.msra.mxu1 %v244_v9  ;;  %s2911_s24 = sld [smem:[#allocation3 + $0xa]]  ;;  %s2913_s27 = sld [smem:[#allocation3 + $0x25]] }
  0x2f   : > { %3621 = vst [vmem:[#allocation12_spill] sm:$0xff] %v2802_v25  ;;  %vm603_vm1 = vcmp.eq.s32.totalorder %v2659_v13, %v2802_v25  ;;  %s2928_s28 = sld [smem:[#allocation3 + $0xb]]  ;;  %s3049_s7 = sld [smem:[#allocation3 + $0x14]] }
  0x30   : > { %2175 = vmatmul.mubr.msk.f32.gmra.mrb[4].mxu0 %vm285_vm0, %v226_v7  ;;  %2173 = vmatmul.mubr.msk.f32.gmra.mrb[4].mxu1 %vm285_vm0, %v226_v7  ;;  %s3061_s1 = sld [smem:[#allocation3 + $0x27]]  ;;  %s3124_s2 = sld [smem:[#allocation3 + $0x18]] }
  0x31   : > { %2289 = vmatprep.mubr.msk.f32.mxu1 %vm285_vm0, %v225_v6  ;;  %v682_v1 = vstv %s2831_s17  ;;  %s3023_s17 = sld [smem:[#allocation3 + $0x13]]  ;;  %s3151_s3 = sld [smem:[#allocation3 + $0x1e]] }
  0x32   : > { %s3153_s23 = sld [smem:[#allocation3 + $0x1f]]  ;;  %s3158_s5 = sld [smem:[#allocation3 + $0x19]] }
  0x33   : > { %s3171_s0 = sld [smem:[#allocation3 + $0x20]]  ;;  %s3175_s4 = sld [smem:[#allocation3 + $0x1a]] }
  0x34   : > { %2290 = vmatmul.mubr.msk.f32.vlgmr.msra.gmra.mrb[6].mxu1 %vm285_vm0, %v226_v7 }
  0xfb   : > { %v358_v23 = vpop.f32.mrb[0].mxu0  ;;  %v364_v24 = vpop.f32.mrb[0].mxu1 }
  0xfc   : > { %v359_v26 = vadd.f32 %v358_v23, %v253_v19  ;;  %v365_v27 = vadd.f32 %v364_v24, %v253_v19  ;;  %v360_v28 = vpop.f32.mrb[1].mxu0  ;;  %v366_v29 = vpop.f32.mrb[1].mxu1  ;;  %v2786_v19 = vld [vmem:[%s2769_s29 + $0x8] sm:$0xff]  ;;  %v3580_v23 = vstv %s2758_s25  ;;  %v3579_v24 = vstv %s2760_s26 }
  0xfd   : > { %v361_v30 = vadd.f32 %v360_v28, %v257_v20  ;;  %v367_v31 = vadd.f32 %v366_v29, %v257_v20  ;;  %v2789_v20 = vld [vmem:[%s2769_s29 + $0x18] sm:$0xff]  ;;  %v600_v28 = vadd.s32 8, %v2659_v13  ;;  %v2812_v29 = vld [vmem:[%s2769_s29 + $0x28] sm:$0xff]  ;;  %v3626_v13 = vstv %s3023_s17 }
  0xfe   : > { %v2365_v33 = vpack.c.bf16 %v365_v27, %v359_v26  ;;  %v733_v26 = vmul.f32 %v731_v21, %v2786_v19  ;;  %v737_v27 = vmul.f32 %v2789_v20, %v735_v22 }
  0xff   : > { %v2369_v35 = vpack.c.bf16 %v367_v31, %v361_v30  ;;  %v2678_v36 = vpop.f32.mrb[2].mxu0  ;;  %v435_v37 = vpop.f32.mrb[2].mxu1  ;;  %v741_v30 = vstv %s2771_s30  ;;  %vm604_vm2 = vcmp.eq.s32.totalorder %v600_v28, %v2802_v25  ;;  %s2940_s30 = sld [smem:[#allocation3 + $0x22]] }
 0x100   : > { %3617 = vst [vmem:[#allocation9_spill] sm:$0xff] %v2678_v36  ;;  %v514_v39 = vpop.f32.mrb[3].mxu0  ;;  %2366 = vmatprep.subr.bf16.mxu1 %v2365_v33  ;;  %v437_v40 = vpop.f32.mrb[3].mxu1  ;;  %v436_v42 = vadd.f32 %v435_v37, %v261_v34  ;;  %v3578_v37 = vstv %s2779_s9 }
 0x101   : > { %v515_v41 = vadd.f32 %v514_v39, %v273_v32  ;;  %2368 = vmatpush3.bf16.msra.mxu1 %v2365_v33  ;;  %2370 = vmatprep.subr.bf16.mxu0 %v2369_v35  ;;  %v438_v44 = vadd.f32 %v437_v40, %v265_v38  ;;  %v964_v33 = vmul.f32 %v2789_v20, %v3579_v24 }
 0x102   : > { %2372 = vmatpush3.bf16.msra.mxu0 %v2369_v35  ;;  %v1481_v35 = vstv %s2776_s8  ;;  %v743_v39 = vmul.f32 %v2812_v29, %v741_v30  ;;  %s2949_s8 = sld [smem:[#allocation3 + $0x2b]] }
 0x103   : > { %688 = vperm.xlu1 %2442, %v515_v41   ;;  %627 = vperm.xlu0 %2441, %v515_v41   ;;  %v2681_v43 = vpop.f32.mrb[4].mxu0  ;;  %v441_v45 = vpop.f32.mrb[4].mxu1 }
 0x104   : > { %3618 = vst [vmem:[#allocation10_spill] sm:$0xff] %v2681_v43  ;;  %v520_v46 = vpop.f32.mrb[5].mxu0  ;;  %v442_v47 = vadd.f32 %v441_v45, %v261_v34  ;;  %v443_v48 = vpop.f32.mrb[5].mxu1  ;;  %v1477_v34 = vstv %s2774_s6  ;;  %v3583_v45 = vstv %s2793_s10  ;;  %s2930_s6 = sld [smem:[#allocation3 + $0x21]] }
 0x105   : > { %v444_v49 = vadd.f32 %v443_v48, %v265_v38  ;;  %v521_v62 = vadd.f32 %v520_v46, %v273_v32  ;;  %v960_v32 = vmul.f32 %v3580_v23, %v2786_v19  ;;  %v739_v38 = vadd.f32 %v737_v27, %v733_v26  ;;  %3623 = sst [smem:[#allocation13_spill]] %s2940_s30 }
 0x106   : > { %v2683_v50 = vpack.c.bf16 %v442_v47, %v436_v42  ;;  %v1479_v40 = vmul.f32 %v1477_v34, %v2786_v19  ;;  %v2851_v46 = vsel %vm603_vm1, 1.0, %v2559_v4 }
 0x107   : > { %2444 = vset.pattern.permute.xlu1 %v2562_v51  ;;  %2443 = vset.pattern.permute.xlu0 %v2563_v52  ;;  %v2687_v53 = vpack.c.bf16 %v444_v49, %v438_v44  ;;  %v2291_v54 = vpop.f32.mrb[6].mxu1  ;;  %v966_v42 = vadd.f32 %v964_v33, %v960_v32  ;;  %v970_v44 = vmul.f32 %v2812_v29, %v3578_v37  ;;  %v2858_v49 = vld [vmem:[%s2769_s29] sm:$0xff]  ;;  %v1256_v33 = vstv %s2839_s18  ;;  %s3032_s18 = sld [smem:[#allocation3 + $0x11]] }
 0x108   : > { %917 = vperm.xlu1 %2444, %v515_v41   ;;  %747 = vperm.xlu0 %2443, %v515_v41   ;;  %v589_v55 = vpop.f32.mrb[7].mxu1  ;;  %v2704_v3 = vadd.f32 %v2291_v54, %v277_v2  ;;  %v676_v54 = vstv %s2799_s12  ;;  %v732_v26 = vmul.f32 %v731_v21, %v2858_v49  ;;  %v1478_v24 = vmul.f32 %v1477_v34, %v2858_v49  ;;  %s2995_s12 = sld [smem:[#allocation3 + $0xf]] }
 0x109   : > { %3619 = vst [vmem:[#allocation11_spill] sm:$0xff] %v2687_v53  ;;  %2374 = vmatprep.subr.bf16.mxu1 %v2683_v50  ;;  %2378 = vmatprep.subr.bf16.mxu0 %v2687_v53  ;;  %v590_v5 = vadd.f32 %v589_v55, %v277_v2  ;;  %v2868_v55 = vsel %vm604_vm2, 1.0, %v2559_v4 }
 0x10c   : > { %2445 = vset.pattern.permute.xlu1 %v2564_v56  ;;  %2446 = vset.pattern.permute.xlu0 %v2565_v57 }
 0x10d   : > { %974 = vperm.xlu1 %2445, %v515_v41   ;;  %1033 = vperm.xlu0 %2446, %v515_v41  }
 0x111   : > { %2447 = vset.pattern.permute.xlu1 %v2566_v58  ;;  %2449 = vset.pattern.permute.xlu0 %v2567_v59 }
 0x112   : > { %1205 = vperm.xlu1 %2447, %v515_v41   ;;  %1321 = vperm.xlu0 %2449, %v515_v41  }
 0x116   : > { %2448 = vset.pattern.permute.xlu1 %v2568_v60  ;;  %2452 = vset.pattern.permute.xlu0 %v2569_v61 }
 0x117   : > { %1262 = vperm.xlu1 %2448, %v515_v41   ;;  %1609 = vperm.xlu0 %2452, %v515_v41  }
 0x11b   : > { %2450 = vset.pattern.permute.xlu1 %v2570_v63  ;;  %2453 = vset.pattern.permute.xlu0 %v2561_v11 }
 0x11c   : > { %1493 = vperm.xlu1 %2450, %v515_v41   ;;  %632 = vperm.xlu0 %2453, %v521_v62  }
 0x120   : > { %2451 = vset.pattern.permute.xlu1 %v2571_v0  ;;  %2456 = vset.pattern.permute.xlu0 %v2562_v51 }
 0x121   : > { %1550 = vperm.xlu1 %2451, %v515_v41   ;;  %921 = vperm.xlu0 %2456, %v521_v62   ;;  %v1483_v41 = vmul.f32 %v2789_v20, %v1481_v35 }
 0x125   : > { %2454 = vset.pattern.permute.xlu1 %v2560_v10  ;;  %2459 = vset.pattern.permute.xlu0 %v2566_v58 }
 0x126   : > { %692 = vperm.xlu1 %2454, %v521_v62   ;;  %1209 = vperm.xlu0 %2459, %v521_v62  }
 0x12a   : > { %2455 = vset.pattern.permute.xlu1 %v2563_v52  ;;  %2462 = vset.pattern.permute.xlu0 %v2570_v63 }
 0x12b   : > { %751 = vperm.xlu1 %2455, %v521_v62   ;;  %1497 = vperm.xlu0 %2462, %v521_v62  }
 0x12f   : > { %2457 = vset.pattern.permute.xlu1 %v2564_v56  ;;  %2467 = vset.pattern.permute.xlu0 %v2563_v52 }
 0x130   : > { %978 = vperm.xlu1 %2457, %v521_v62   ;;  %770 = vperm.xlu0 %2467, %v2704_v3  }
 0x134   : > { %2458 = vset.pattern.permute.xlu1 %v2565_v57  ;;  %2469 = vset.pattern.permute.xlu0 %v2564_v56 }
 0x135   : > { %1037 = vperm.xlu1 %2458, %v521_v62   ;;  %997 = vperm.xlu0 %2469, %v2704_v3  }
 0x139   : > { %2460 = vset.pattern.permute.xlu1 %v2568_v60  ;;  %2472 = vset.pattern.permute.xlu0 %v2568_v60 }
 0x13a   : > { %1266 = vperm.xlu1 %2460, %v521_v62   ;;  %1285 = vperm.xlu0 %2472, %v2704_v3  }
 0x13e   : > { %2461 = vset.pattern.permute.xlu1 %v2567_v59  ;;  %2474 = vset.pattern.permute.xlu0 %v2570_v63 }
 0x13f   : > { %1325 = vperm.xlu1 %2461, %v521_v62   ;;  %1516 = vperm.xlu0 %2474, %v2704_v3  }
 0x143   : > { %2463 = vset.pattern.permute.xlu1 %v2571_v0  ;;  %2477 = vset.pattern.permute.xlu0 %v2560_v10 }
 0x144   : > { %1554 = vperm.xlu1 %2463, %v521_v62   ;;  %707 = vperm.xlu0 %2477, %v590_v5  }
 0x148   : > { %2464 = vset.pattern.permute.xlu1 %v2569_v61  ;;  %2478 = vset.pattern.permute.xlu0 %v2563_v52  ;;  %v672_v52 = vstv %s2797_s11  ;;  %s2974_s11 = sld [smem:[#allocation3 + $0x24]] }
 0x149   : > { %1613 = vperm.xlu1 %2464, %v521_v62   ;;  %766 = vperm.xlu0 %2478, %v590_v5   ;;  %v3581_v62 = vstv %s2817_s16 }
 0x14d   : > { %2465 = vset.pattern.permute.xlu1 %v2561_v11  ;;  %2483 = vset.pattern.permute.xlu0 %v2568_v60  ;;  %v1489_v60 = vmul.f32 %v2812_v29, %v3583_v45 }
 0x14e   : > { %654 = vperm.xlu1 %2465, %v2704_v3   ;;  %1281 = vperm.xlu0 %2483, %v590_v5  }
 0x152   : > { %2466 = vset.pattern.permute.xlu1 %v2560_v10  ;;  %2485 = vset.pattern.permute.xlu0 %v2570_v63  ;;  %v2879_v63 = vadd.f32 %v970_v44, %v966_v42  ;;  %v678_v42 = vmul.f32 %v2789_v20, %v676_v54 }
 0x153   : > { %711 = vperm.xlu1 %2466, %v2704_v3   ;;  %1512 = vperm.xlu0 %2485, %v590_v5  }
 0x157   : > { %2468 = vset.pattern.permute.xlu1 %v2562_v51  ;;  %2487 = vset.pattern.permute.xlu0 %v2569_v61 }
 0x158   : > { %940 = vperm.xlu1 %2468, %v2704_v3   ;;  %1628 = vperm.xlu0 %2487, %v590_v5  }
 0x15c   : > { %2470 = vset.pattern.permute.xlu1 %v2565_v57 }
 0x15d   : > { %1056 = vperm.xlu1 %2470, %v2704_v3  }
 0x161   : > { %2471 = vset.pattern.permute.xlu1 %v2566_v58 }
 0x162   : > { %1228 = vperm.xlu1 %2471, %v2704_v3  }
 0x166   : > { %2473 = vset.pattern.permute.xlu1 %v2567_v59 }
 0x167   : > { %1344 = vperm.xlu1 %2473, %v2704_v3  }
 0x16b   : > { %2475 = vset.pattern.permute.xlu1 %v2571_v0 }
 0x16c   : > { %1573 = vperm.xlu1 %2475, %v2704_v3  }
 0x170   : > { %2476 = vset.pattern.permute.xlu1 %v2561_v11 }
 0x171   : > { %649 = vperm.xlu1 %2476, %v590_v5  }
 0x175   : > { %2479 = vset.pattern.permute.xlu1 %v2562_v51  ;;  %v2861_v51 = vld [vmem:[%s2769_s29 + $0x10] sm:$0xff] }
 0x176   : > { %936 = vperm.xlu1 %2479, %v590_v5   ;;  %v677_v4 = vmul.f32 %v2861_v51, %v676_v54  ;;  %v736_v27 = vmul.f32 %v2861_v51, %v735_v22  ;;  %v1482_v23 = vmul.f32 %v2861_v51, %v1481_v35 }
 0x17a   : > { %2480 = vset.pattern.permute.xlu1 %v2564_v56  ;;  %v2870_v56 = vadd.f32 %v743_v39, %v739_v38  ;;  %v616_v39 = vmul.f32 %v2789_v20, %v3581_v62  ;;  %v738_v62 = vadd.f32 %v736_v27, %v732_v26  ;;  %v1484_v26 = vadd.f32 %v1482_v23, %v1478_v24 }
 0x17b   : > { %993 = vperm.xlu1 %2480, %v590_v5   ;;  %v3622_v27 = vstv %s2793_s10  ;;  %s2972_s10 = sld [smem:[#allocation3 + $0x23]] }
 0x17f   : > { %2481 = vset.pattern.permute.xlu1 %v2565_v57  ;;  %v1246_v57 = vstv %s2806_s13  ;;  %s2997_s13 = sld [smem:[#allocation3 + $0x10]] }
 0x180   : > { %1052 = vperm.xlu1 %2481, %v590_v5   ;;  %v1248_v2 = vmul.f32 %v1246_v57, %v2786_v19  ;;  %v1247_v21 = vmul.f32 %v1246_v57, %v2858_v49 }
 0x181   : > { %3624 = sst [smem:[#allocation14_spill]] %s2972_s10 }
 0x182   : > { %v2738_v6 = vpop.permute.xlu1 %688  ;;  %v2740_v7 = vpop.permute.xlu0 %627 }
 0x184   : > { %2482 = vset.pattern.permute.xlu1 %v2566_v58  ;;  %v1250_v58 = vstv %s2808_s14  ;;  %s3021_s14 = sld [smem:[#allocation3 + $0x12]] }
 0x185   : > { %1224 = vperm.xlu1 %2482, %v590_v5   ;;  %v1251_v22 = vmul.f32 %v2861_v51, %v1250_v58 }
 0x187   : > { %v2743_v8 = vpop.permute.xlu1 %917  ;;  %v2745_v9 = vpop.permute.xlu0 %747  ;;  %v1253_v35 = vadd.f32 %v1251_v22, %v1247_v21  ;;  %v3589_v22 = vstv %s2905_s22 }
 0x189   : > { %2484 = vset.pattern.permute.xlu1 %v2567_v59  ;;  %v1485_v59 = vadd.f32 %v1483_v41, %v1479_v40  ;;  %v3584_v40 = vstv %s2841_s19  ;;  %v674_v41 = vmul.f32 %v672_v52, %v2786_v19 }
 0x18a   : > { %1340 = vperm.xlu1 %2484, %v590_v5  }
 0x18b   : > { %v2915_v44 = vadd.f32 %v1489_v60, %v1485_v59  ;;  %v622_v59 = vmul.f32 %v2812_v29, %v3584_v40 }
 0x18c   : > { %v2748_v10 = vpop.permute.xlu1 %974  ;;  %v2750_v11 = vpop.permute.xlu0 %1033 }
 0x18d   : > { %v1040_v36 = vmul.f32 %v2750_v11, %v2851_v46 }
 0x18e   : > { %2486 = vset.pattern.permute.xlu1 %v2571_v0  ;;  %v673_v0 = vmul.f32 %v672_v52, %v2858_v49 }
 0x18f   : > { %1569 = vperm.xlu1 %2486, %v590_v5   ;;  %v2887_v5 = vld [vmem:[%s2769_s29 + $0x20] sm:$0xff] }
 0x190   : > { %v683_v37 = vmul.f32 %v2887_v5, %v682_v1  ;;  %v679_v57 = vadd.f32 %v677_v4, %v673_v0  ;;  %v1257_v60 = vmul.f32 %v2887_v5, %v1256_v33  ;;  %v680_v0 = vadd.f32 %v678_v42, %v674_v41 }
 0x191   : > { %v2762_v14 = vpop.permute.xlu1 %1205  ;;  %v2764_v15 = vpop.permute.xlu0 %1321  ;;  %v754_v4 = vmul.f32 %v2745_v9, %v2851_v46  ;;  %v635_v9 = vmul.f32 %v2740_v7, %v2851_v46  ;;  %v981_v41 = vmul.f32 %v2748_v10, %v2851_v46 }
 0x193   : > { %2488 = vset.pattern.permute.xlu1 %v2569_v61  ;;  %v3582_v61 = vstv %s2815_s15  ;;  %v756_v42 = vsel %vm637_vm3, %v754_v4, 0.0  ;;  %v983_v4 = vsel %vm637_vm3, %v981_v41, 0.0 }
 0x194   : > { %1632 = vperm.xlu1 %2488, %v2704_v3   ;;  %v1252_v3 = vmul.f32 %v2789_v20, %v1250_v58  ;;  %v612_v38 = vmul.f32 %v3582_v61, %v2786_v19  ;;  %v742_v58 = vmul.f32 %v2887_v5, %v741_v30  ;;  %v1258_v61 = vmul.f32 %v2812_v29, %v1256_v33 }
 0x195   : > { %v684_v30 = vmul.f32 %v2812_v29, %v682_v1 }
 0x196   : > { %v2781_v17 = vpop.permute.xlu1 %1262  ;;  %v2783_v18 = vpop.permute.xlu0 %1609  ;;  %v1254_v54 = vadd.f32 %v1252_v3, %v1248_v2  ;;  %v618_v45 = vadd.f32 %v616_v39, %v612_v38  ;;  %v1488_v38 = vmul.f32 %v2887_v5, %v3622_v27  ;;  %v2944_v39 = vadd.f32 %v683_v37, %v679_v57 }
 0x197   : > { %v2946_v1 = vadd.f32 %v742_v58, %v738_v62  ;;  %v3588_v37 = vstv %s2911_s24  ;;  %v2966_v58 = vadd.f32 %v1257_v60, %v1253_v35  ;;  %v638_v35 = vsel %vm637_vm3, %v635_v9, 0.0 }
 0x198   : > { %v2954_v24 = vadd.f32 %v1258_v61, %v1254_v54  ;;  %v2968_v61 = vadd.f32 %v684_v30, %v680_v0  ;;  %v2970_v54 = vadd.f32 %v1488_v38, %v1484_v26  ;;  %v907_v60 = vmul.f32 %v2789_v20, %v3588_v37 }
 0x199   : > { %v3585_v0 = vstv %s2928_s28  ;;  %v3586_v30 = vstv %s2930_s6  ;;  %v695_v38 = vmul.f32 %v2738_v6, %v2851_v46 }
 0x19b   : > { %v2819_v12 = vpop.permute.xlu1 %1493  ;;  %v2821_v31 = vpop.permute.xlu0 %632 }
 0x19c   : > { %v636_v33 = vmul.f32 %v2821_v31, %v2868_v55  ;;  %v2959_v31 = vadd.f32 %v622_v59, %v618_v45 }
 0x19e   : > { %v639_v10 = vsel %vm637_vm3, %v636_v33, 0.0 }
 0x19f   : > { %v640_v33 = vadd.f32 %v639_v10, %v638_v35  ;;  %v913_v35 = vmul.f32 %v2812_v29, %v3585_v0  ;;  %v3591_v0 = vstv %s2972_s10  ;;  %s3178_s10 = sld [smem:[#allocation3 + $0x2a]] }
 0x1a0   : > { %v2853_v47 = vpop.permute.xlu1 %1550  ;;  %v2855_v48 = vpop.permute.xlu0 %921 }
 0x1a5   : > { %v2893_v28 = vpop.permute.xlu1 %692  ;;  %v2895_v32 = vpop.permute.xlu0 %1209 }
 0x1aa   : > { %v752_v34 = vpop.permute.xlu1 %751  ;;  %v1498_v3 = vpop.permute.xlu0 %1497 }
 0x1ab   : > { %v755_v2 = vmul.f32 %v752_v34, %v2868_v55  ;;  %v903_v34 = vmul.f32 %v3589_v22, %v2786_v19  ;;  %v1501_v26 = vmul.f32 %v1498_v3, %v2868_v55  ;;  %v925_v3 = vmul.f32 %v2855_v48, %v2868_v55 }
 0x1ad   : > { %v757_v23 = vsel %vm637_vm3, %v755_v2, 0.0  ;;  %v696_v2 = vmul.f32 %v2893_v28, %v2868_v55  ;;  %v1500_v28 = vmul.f32 %v2819_v12, %v2851_v46  ;;  %v924_v12 = vmul.f32 %v2743_v8, %v2851_v46 }
 0x1ae   : > { %v758_v45 = vadd.f32 %v757_v23, %v756_v42  ;;  %v3587_v23 = vstv %s2940_s30  ;;  %v1269_v8 = vmul.f32 %v2781_v17, %v2851_v46  ;;  %s3220_s30 = sld [smem:[#allocation3 + $0x2d]] }
 0x1af   : > { %v979_v57 = vpop.permute.xlu1 %978  ;;  %v2964_v7 = vpop.permute.xlu0 %770  ;;  %v698_v48 = vsel %vm637_vm3, %v696_v2, 0.0  ;;  %v1598_v40 = vmul.f32 %v2861_v51, %v3587_v23  ;;  %v1502_v2 = vsel %vm637_vm3, %v1500_v28, 0.0  ;;  %v926_v62 = vsel %vm637_vm3, %v924_v12, 0.0 }
 0x1b0   : > { %v982_v59 = vmul.f32 %v979_v57, %v2868_v55  ;;  %v759_v41 = vrot.slane %v758_v45, 4 }
 0x1b2   : > { %v984_v27 = vsel %vm637_vm3, %v982_v59, 0.0  ;;  %v909_v59 = vadd.f32 %v907_v60, %v903_v34  ;;  %v697_v34 = vsel %vm637_vm3, %v695_v38, 0.0  ;;  %v641_v60 = vrot.slane %v640_v33, 4 }
 0x1b3   : > { %v985_v9 = vadd.f32 %v984_v27, %v983_v4  ;;  %v1594_v4 = vmul.f32 %v3586_v30, %v2858_v49  ;;  %v1503_v27 = vsel %vm637_vm3, %v1501_v26, 0.0  ;;  %v927_v26 = vsel %vm637_vm3, %v925_v3, 0.0 }
 0x1b4   : > { %v3003_v42 = vpop.permute.xlu1 %1037  ;;  %v3005_v6 = vpop.permute.xlu0 %997  ;;  %v760_v23 = vadd.f32 %v759_v41, %v758_v45  ;;  %v699_v57 = vadd.f32 %v698_v48, %v697_v34  ;;  %v1504_v37 = vadd.f32 %v1503_v27, %v1502_v2  ;;  %v3036_v52 = vadd.f32 %v913_v35, %v909_v59 }
 0x1b5   : > { %v986_v10 = vrot.slane %v985_v9, 4  ;;  %v1600_v28 = vadd.f32 %v1598_v40, %v1594_v4  ;;  %v1604_v3 = vmul.f32 %v2887_v5, %v3591_v0  ;;  %v642_v45 = vadd.f32 %v641_v60, %v640_v33 }
 0x1b6   : > { %v928_v41 = vadd.f32 %v927_v26, %v926_v62  ;;  %v3592_v48 = vstv %s2995_s12  ;;  %v1213_v59 = vmul.f32 %v2895_v32, %v2868_v55  ;;  %v761_v35 = vrot.slane %v760_v23, 2 }
 0x1b7   : > { %v987_v22 = vadd.f32 %v986_v10, %v985_v9  ;;  %v3595_v9 = vstv %s2997_s13  ;;  %v1271_v10 = vsel %vm637_vm3, %v1269_v8, 0.0  ;;  %v700_v40 = vrot.slane %v699_v57, 4 }
 0x1b8   : > { %v1505_v4 = vrot.slane %v1504_v37, 4  ;;  %v1019_v60 = vmul.f32 %v3592_v48, %v2786_v19  ;;  %v1023_v8 = vmul.f32 %v2789_v20, %v3595_v9  ;;  %v1212_v26 = vmul.f32 %v2762_v14, %v2851_v46 }
 0x1b9   : > { %v1267_v38 = vpop.permute.xlu1 %1266  ;;  %v3034_v21 = vpop.permute.xlu0 %1285  ;;  %v988_v27 = vrot.slane %v987_v22, 2  ;;  %v762_v0 = vadd.f32 %v761_v35, %v760_v23  ;;  %v3066_v30 = vadd.f32 %v1604_v3, %v1600_v28  ;;  %v3598_v48 = vstv %s3032_s18 }
 0x1ba   : > { %v1270_v17 = vmul.f32 %v1267_v38, %v2868_v55  ;;  %v929_v38 = vrot.slane %v928_v41, 4  ;;  %v701_v25 = vadd.f32 %v700_v40, %v699_v57  ;;  %v1506_v9 = vadd.f32 %v1505_v4, %v1504_v37 }
 0x1bb   : > { %v989_v2 = vadd.f32 %v988_v27, %v987_v22  ;;  %v3071_v43 = vadd.f32 %v1023_v8, %v1019_v60  ;;  %v3625_v14 = vstv %s3021_s14  ;;  %v1214_v23 = vsel %vm637_vm3, %v1212_v26, 0.0 }
 0x1bc   : > { %v1272_v12 = vsel %vm637_vm3, %v1270_v17, 0.0  ;;  %v1191_v16 = vmul.f32 %v3625_v14, %v2786_v19  ;;  %v930_v28 = vadd.f32 %v929_v38, %v928_v41  ;;  %v763_v35 = vrot.slane %v762_v0, 1 }
 0x1bd   : > { %v1273_v33 = vadd.f32 %v1272_v12, %v1271_v10  ;;  %v643_v10 = vrot.slane %v642_v45, 2  ;;  %v1215_v12 = vsel %vm637_vm3, %v1213_v59, 0.0  ;;  %v1195_v59 = vmul.f32 %v2789_v20, %v3626_v13 }
 0x1be   : > { %v1326_v62 = vpop.permute.xlu1 %1325  ;;  %v3051_v34 = vpop.permute.xlu0 %1516  ;;  %v1216_v11 = vadd.f32 %v1215_v12, %v1214_v23  ;;  %v1041_v40 = vmul.f32 %v3003_v42, %v2868_v55  ;;  %v3599_v4 = vstv %s3049_s7  ;;  %v990_v27 = vrot.slane %v989_v2, 1 }
 0x1bf   : > { %v1274_v17 = vrot.slane %v1273_v33, 4  ;;  %v644_v3 = vadd.f32 %v643_v10, %v642_v45  ;;  %v1507_v13 = vrot.slane %v1506_v9, 2  ;;  %v702_v60 = vrot.slane %v701_v25, 2 }
 0x1c0   : > { %v1616_v41 = vmul.f32 %v2783_v18, %v2851_v46  ;;  %v3090_v8 = vmul.f32 %v2812_v29, %v3598_v48  ;;  %v1197_v26 = vadd.f32 %v1195_v59, %v1191_v16  ;;  %v1042_v38 = vsel %vm637_vm3, %v1040_v36, 0.0 }
 0x1c1   : > { %v1275_v32 = vadd.f32 %v1274_v17, %v1273_v33  ;;  %v645_v17 = vrot.slane %v644_v3, 1  ;;  %v931_v10 = vrot.slane %v930_v28, 2  ;;  %v1201_v42 = vmul.f32 %v2812_v29, %v3599_v4 }
 0x1c2   : > { %v1217_v12 = vrot.slane %v1216_v11, 4  ;;  %v1043_v14 = vsel %vm637_vm3, %v1041_v40, 0.0  ;;  %v3102_v48 = vadd.f32 %v990_v27, %v989_v2  ;;  %v1508_v16 = vadd.f32 %v1507_v13, %v1506_v9 }
 0x1c3   : > { %v1276_v37 = vrot.slane %v1275_v32, 2  ;;  %v1555_v57 = vpop.permute.xlu1 %1554  ;;  %v3080_v22 = vpop.permute.xlu0 %707  ;;  %v703_v59 = vadd.f32 %v702_v60, %v701_v25  ;;  %v1328_v45 = vmul.f32 %v2764_v15, %v2851_v46  ;;  %v1618_v4 = vsel %vm637_vm3, %v1616_v41, 0.0 }
 0x1c4   : > { %v1044_v40 = vadd.f32 %v1043_v14, %v1042_v38  ;;  %v1329_v53 = vmul.f32 %v1326_v62, %v2868_v55  ;;  %v3113_v27 = vadd.f32 %v645_v17, %v644_v3  ;;  %v932_v13 = vadd.f32 %v931_v10, %v930_v28 }
 0x1c5   : > { %v1277_v33 = vadd.f32 %v1276_v37, %v1275_v32  ;;  %v3097_v32 = vadd.f32 %v763_v35, %v762_v0  ;;  %v1557_v0 = vmul.f32 %v2853_v47, %v2851_v46  ;;  %v1558_v35 = vmul.f32 %v1555_v57, %v2868_v55 }
 0x1c6   : > { %v1218_v60 = vadd.f32 %v1217_v12, %v1216_v11  ;;  %v1001_v47 = vadd.f32 %v3005_v6, %v3102_v48  ;;  %v1509_v41 = vrot.slane %v1508_v16, 1  ;;  %v704_v57 = vrot.slane %v703_v59, 1 }
 0x1c7   : > { %v1278_v23 = vrot.slane %v1277_v33, 1  ;;  %v774_v25 = vadd.f32 %v2964_v7, %v3097_v32  ;;  %v1560_v62 = vsel %vm637_vm3, %v1558_v35, 0.0  ;;  %v1559_v7 = vsel %vm637_vm3, %v1557_v0, 0.0 }
 0x1c8   : > { %v1614_v18 = vpop.permute.xlu1 %1613  ;;  %v3100_v37 = vpop.permute.xlu0 %766  ;;  %v1045_v28 = vrot.slane %v1044_v40, 4  ;;  %v1331_v11 = vsel %vm637_vm3, %v1329_v53, 0.0  ;;  %v3128_v6 = vadd.f32 %v1201_v42, %v1197_v26  ;;  %v1561_v35 = vadd.f32 %v1560_v62, %v1559_v7 }
 0x1c9   : > { %v1617_v36 = vmul.f32 %v1614_v18, %v2868_v55  ;;  %v3117_v9 = vadd.f32 %v1278_v23, %v1277_v33  ;;  %v1330_v23 = vsel %vm637_vm3, %v1328_v45, 0.0  ;;  %v3138_v0 = vadd.f32 %v704_v57, %v703_v59 }
 0x1ca   : > { %v1003_v53 = vadd.f32 %v1001_v47, %v2879_v63  ;;  %v1046_v59 = vadd.f32 %v1045_v28, %v1044_v40 }
 0x1cb   : > { %v1619_v2 = vsel %vm637_vm3, %v1617_v36, 0.0  ;;  %v3136_v36 = vadd.f32 %v1509_v41, %v1508_v16  ;;  %v1562_v41 = vrot.slane %v1561_v35, 4 }
 0x1cc   : > { %v1620_v15 = vadd.f32 %v1619_v2, %v1618_v4  ;;  %v776_v4 = vadd.f32 %v774_v25, %v2870_v56  ;;  %v1332_v2 = vadd.f32 %v1331_v11, %v1330_v23  ;;  %v1219_v56 = vrot.slane %v1218_v60, 2  ;;  %v3142_v25 = vld [vmem:[%s2769_s29 + $0x38] sm:$0xff] }
 0x1cd   : > { %v655_v38 = vpop.permute.xlu1 %654  ;;  %v1282_v14 = vpop.permute.xlu0 %1281  ;;  %vm608_vm6 = vcmp.gt.f32.partialorder %v3142_v25, 0.0  ;;  %v1007_v40 = vmul.f32 0.01, %v1003_v53  ;;  %vm1005_vm8 = vcmp.gt.f32.partialorder %v1003_v53, 0.0  ;;  %v1047_v23 = vrot.slane %v1046_v59, 2 }
 0x1ce   : > { %v1621_v18 = vrot.slane %v1620_v15, 4  ;;  %v658_v3 = vadd.f32 %v655_v38, %v3113_v27  ;;  %v1288_v17 = vadd.f32 %v1282_v14, %v3117_v9  ;;  %v933_v38 = vrot.slane %v932_v13, 1 }
 0x1cf   : > { %vm778_vm4 = vcmp.gt.f32.partialorder %v776_v4, 0.0  ;;  %v780_v16 = vmul.f32 0.01, %v776_v4  ;;  %v1333_v14 = vrot.slane %v1332_v2, 4 }
 0x1d0   : > { %v1622_v33 = vadd.f32 %v1621_v18, %v1620_v15  ;;  %v660_v10 = vadd.f32 %v658_v3, %v2959_v31  ;;  %v3133_v12 = vadd.f32 %v1288_v17, %v2966_v58  ;;  %v3155_v62 = vadd.f32 %v933_v38, %v932_v13 }
 0x1d1   : > { %v1220_v18 = vadd.f32 %v1219_v56, %v1218_v60  ;;  %v1305_v3 = vstv %s3124_s2  ;;  %v782_v11 = vsel %vm778_vm4, %v776_v4, %v780_v16  ;;  %v1289_v13 = vadd.f32 %v3034_v21, %v3117_v9  ;;  %s3656_s2 = sld [smem:[#allocation14_spill]] }
 0x1d2   : > { %v712_v26 = vpop.permute.xlu1 %711  ;;  %v1513_v42 = vpop.permute.xlu0 %1512  ;;  %v664_v31 = vmul.f32 0.01, %v660_v10  ;;  %v1623_v45 = vrot.slane %v1622_v33, 2  ;;  %vm662_vm5 = vcmp.gt.f32.partialorder %v660_v10, 0.0  ;;  %v1563_v60 = vadd.f32 %v1562_v41, %v1561_v35 }
 0x1d3   : > { %v715_v58 = vadd.f32 %v712_v26, %v3138_v0  ;;  %v1519_v15 = vadd.f32 %v1513_v42, %v3136_v36  ;;  %v3628_v56 = vstv %s2913_s27  ;;  %v1334_v4 = vadd.f32 %v1333_v14, %v1332_v2 }
 0x1d4   : > { %v1624_v57 = vadd.f32 %v1623_v45, %v1622_v33  ;;  %v1221_v45 = vrot.slane %v1220_v18, 1  ;;  %v3629_v21 = vstv %s2865_s20  ;;  %v1048_v2 = vadd.f32 %v1047_v23, %v1046_v59 }
 0x1d5   : > { %v717_v63 = vadd.f32 %v715_v58, %v2968_v61  ;;  %v3148_v47 = vadd.f32 %v1519_v15, %v2970_v54  ;;  %v666_v61 = vsel %vm662_vm5, %v660_v10, %v664_v31  ;;  %v3627_v10 = vstv %s2974_s11 }
 0x1d6   : > { %v1625_v28 = vrot.slane %v1624_v57, 1  ;;  %v670_v38 = vmul.f32 %v3627_v10, %v666_v61  ;;  %v1009_v58 = vsel %vm1005_vm8, %v1003_v53, %v1007_v40  ;;  %v786_v9 = vmul.f32 %v3629_v21, %v782_v11 }
 0x1d7   : > { %vm719_vm7 = vcmp.gt.f32.partialorder %v717_v63, 0.0  ;;  %v721_v54 = vmul.f32 0.01, %v717_v63  ;;  %v941_v17 = vpop.permute.xlu1 %940  ;;  %v1629_v15 = vpop.permute.xlu0 %1628  ;;  %v1291_v53 = vadd.f32 %v1289_v13, %v2954_v24  ;;  %v1049_v13 = vrot.slane %v1048_v2, 1 }
 0x1d8   : > { %v944_v7 = vadd.f32 %v941_v17, %v3155_v62  ;;  %v3165_v42 = vadd.f32 %v1625_v28, %v1624_v57  ;;  %v1538_v57 = vstv %s3153_s23  ;;  %v1309_v17 = vstv %s3158_s5  ;;  %s3660_s23 = sld [smem:[#allocation18_spill]] }
 0x1d9   : > { %v723_v33 = vsel %vm719_vm7, %v717_v63, %v721_v54  ;;  %v1534_v63 = vstv %s3151_s3  ;;  %v1564_v54 = vrot.slane %v1563_v60, 2  ;;  %v3630_v28 = vstv %s3061_s1  ;;  %s3396_s3 = sld [smem:[#allocation3 + $0x2f]] }
 0x1da   : > { %v946_v26 = vadd.f32 %v944_v7, %v3036_v52  ;;  %v727_v31 = vmul.f32 %v3628_v56, %v723_v33  ;;  %v1635_v35 = vadd.f32 %v1629_v15, %v3165_v42  ;;  %v1335_v7 = vrot.slane %v1334_v4, 2 }
 0x1db   : > { %v3631_v33 = vstv %s2891_s21  ;;  %v1540_v59 = vmul.f32 %v2789_v20, %v1538_v57  ;;  %v1544_v15 = vstv %s3171_s0  ;;  %vm1293_vm10 = vcmp.gt.f32.partialorder %v1291_v53, 0.0 }
 0x1dc   : > { %vm948_vm9 = vcmp.gt.f32.partialorder %v946_v26, 0.0  ;;  %v950_v52 = vmul.f32 0.01, %v946_v26  ;;  %v1057_v16 = vpop.permute.xlu1 %1056  ;;  %v729_v41 = vadd.f32 %v727_v31, %v670_v38  ;;  %v3184_v40 = vadd.f32 %v1635_v35, %v3066_v30 }
 0x1dd   : > { %v1013_v10 = vmul.f32 %v3631_v33, %v1009_v58  ;;  %v3191_v38 = vadd.f32 %v1221_v45, %v1220_v18  ;;  %v1536_v30 = vmul.f32 %v1534_v63, %v2786_v19  ;;  %v1307_v18 = vmul.f32 %v1305_v3, %v2786_v19 }
 0x1de   : > { %v952_v14 = vsel %vm948_vm9, %v946_v26, %v950_v52  ;;  %v788_v61 = vadd.f32 %v786_v9, %v729_v41  ;;  %v1295_v31 = vmul.f32 0.01, %v1291_v53  ;;  %v1565_v45 = vadd.f32 %v1564_v54, %v1563_v60  ;;  %s3661_s0 = smov %s3660_s23 }
 0x1df   : > { %v956_v11 = vmul.f32 %v3630_v28, %v952_v14  ;;  %v1311_v21 = vmul.f32 %v2789_v20, %v1309_v17  ;;  %v1315_v9 = vstv %s3175_s4  ;;  %v1336_v52 = vadd.f32 %v1335_v7, %v1334_v4 }
 0x1e0   : > { %v3195_v24 = vsel %vm608_vm6, %v788_v61, -1e+30  ;;  %v1520_v19 = vadd.f32 %v3051_v34, %v3136_v36  ;;  %v1542_v41 = vadd.f32 %v1540_v59, %v1536_v30  ;;  %v1242_v14 = vstv %s3178_s10 }
 0x1e1   : > { %v1229_v23 = vpop.permute.xlu1 %1228  ;;  %v794_v26 = vsel %vm637_vm3, %v3195_v24, -inf  ;;  %v3208_v56 = vadd.f32 %v1013_v10, %v956_v11  ;;  %v3222_v61 = vadd.f32 %v1049_v13, %v1048_v2  ;;  %v1546_v60 = vmul.f32 %v2812_v29, %v1544_v15 }
 0x1e2   : > { %v1232_v58 = vadd.f32 %v1229_v23, %v3191_v38  ;;  %795 = vmax.xlane.f32.xlu0 %v794_v26  ;;  %v3632_v54 = vstv %s2815_s15  ;;  %v3633_v28 = vstv %s2817_s16  ;;  %v1297_v34 = vsel %vm1293_vm10, %v1291_v53, %v1295_v31  ;;  %s3237_s15 = sld [smem:[#allocation3 + $0x2e]]  ;;  %s3259_s16 = sld [smem:[#allocation3 + $0x29]] }
 0x1e3   : > { %v611_v20 = vmul.f32 %v3632_v54, %v2858_v49  ;;  %v615_v4 = vmul.f32 %v2861_v51, %v3633_v28  ;;  %v1566_v2 = vrot.slane %v1565_v45, 1  ;;  %v714_v7 = vadd.f32 %v3080_v22, %v3138_v0 }
 0x1e4   : > { %v1234_v35 = vadd.f32 %v1232_v58, %v3128_v6  ;;  %v1031_v11 = vadd.f32 %v3090_v8, %v3071_v43  ;;  %v1313_v33 = vadd.f32 %v1311_v21, %v1307_v18  ;;  %v1337_v10 = vrot.slane %v1336_v52, 1 }
 0x1e5   : > { %v1522_v30 = vadd.f32 %v1520_v19, %v2915_v44  ;;  %v1060_v53 = vadd.f32 %v1057_v16, %v3222_v61  ;;  %v1317_v13 = vmul.f32 %v2812_v29, %v1315_v9  ;;  %v3634_v23 = vstv %s2905_s22 }
 0x1e6   : > { %vm1236_vm11 = vcmp.gt.f32.partialorder %v1234_v35, 0.0  ;;  %v1238_v6 = vmul.f32 0.01, %v1234_v35  ;;  %v1345_v36 = vpop.permute.xlu1 %1344  ;;  %v902_v26 = vmul.f32 %v3634_v23, %v2858_v49  ;;  %v3635_v22 = vstv %s2911_s24  ;;  %s3669_s24 = sld [smem:[#allocation19_spill]] }
 0x1e7   : > { %v906_v0 = vmul.f32 %v2861_v51, %v3635_v22  ;;  %v3636_v8 = vstv %s2949_s8  ;;  %v1548_v31 = vadd.f32 %v1546_v60, %v1542_v41  ;;  %v3254_v58 = vadd.f32 %v1566_v2, %v1565_v45 }
 0x1e8   : > { %v1240_v59 = vsel %vm1236_vm11, %v1234_v35, %v1238_v6  ;;  %v1301_v18 = vmul.f32 %v3636_v8, %v1297_v34  ;;  %v617_v44 = vadd.f32 %v615_v4, %v611_v20  ;;  %v3637_v16 = vstv %s2841_s19  ;;  %s3281_s19 = sld [smem:[#allocation3 + $0x2c]] }
 0x1e9   : > { %v1244_v43 = vmul.f32 %v1242_v14, %v1240_v59  ;;  %v621_v21 = vmul.f32 %v2887_v5, %v3637_v16  ;;  %v716_v29 = vadd.f32 %v714_v7, %v2944_v39  ;;  %v773_v19 = vadd.f32 %v3100_v37, %v3097_v32 }
 0x1ea   : > { %v3264_v35 = vadd.f32 %v1337_v10, %v1336_v52  ;;  %v1526_v45 = vmul.f32 0.01, %v1522_v30  ;;  %v1062_v60 = vadd.f32 %v1060_v53, %v1031_v11  ;;  %v1530_v28 = vstv %s3220_s30 }
 0x1eb   : > { %v1574_v54 = vpop.permute.xlu1 %1573  ;;  %v3266_v41 = vadd.f32 %v1301_v18, %v1244_v43  ;;  %vm1524_vm12 = vcmp.gt.f32.partialorder %v1522_v30, 0.0  ;;  %v1319_v4 = vadd.f32 %v1317_v13, %v1313_v33  ;;  %v908_v39 = vadd.f32 %v906_v0, %v902_v26 }
 0x1ec   : > { %v1577_v20 = vadd.f32 %v1574_v54, %v3254_v58  ;;  %v1348_v34 = vadd.f32 %v1345_v36, %v3264_v35  ;;  %v3638_v2 = vstv %s2928_s28  ;;  %v3639_v37 = vstv %s2758_s25 }
 0x1ed   : > { %v912_v32 = vmul.f32 %v2887_v5, %v3638_v2  ;;  %v959_v52 = vmul.f32 %v3639_v37, %v2858_v49  ;;  %v3640_v7 = vstv %s2760_s26  ;;  %v720_v59 = vmul.f32 0.01, %v716_v29 }
 0x1ee   : > { %v1579_v6 = vadd.f32 %v1577_v20, %v1548_v31  ;;  %v963_v10 = vmul.f32 %v2861_v51, %v3640_v7  ;;  %v775_v11 = vadd.f32 %v773_v19, %v2946_v1  ;;  %v623_v53 = vadd.f32 %v621_v21, %v617_v44 }
 0x1ef   : > { %v1587_v33 = vstv %s3237_s15  ;;  %v1528_v36 = vsel %vm1524_vm12, %v1522_v30, %v1526_v45  ;;  %v1066_v13 = vmul.f32 0.01, %v1062_v60  ;;  %vm718_vm14 = vcmp.gt.f32.partialorder %v716_v29, 0.0 }
 0x1f0   : > { %vm1581_vm13 = vcmp.gt.f32.partialorder %v1579_v6, 0.0  ;;  %v1583_v23 = vmul.f32 0.01, %v1579_v6  ;;  %v650_v26 = vpop.permute.xlu1 %649  ;;  %vm1064_vm15 = vcmp.gt.f32.partialorder %v1062_v60, 0.0  ;;  %v1350_v22 = vadd.f32 %v1348_v34, %v1319_v4 }
 0x1f1   : > { %v657_v0 = vadd.f32 %v650_v26, %v3113_v27  ;;  %v914_v1 = vadd.f32 %v912_v32, %v908_v39  ;;  %v965_v8 = vadd.f32 %v963_v10, %v959_v52  ;;  %v1070_v18 = vstv %s3259_s16  ;;  %v3304_v10 = vld [vmem:[%s2769_s29 + $0x30] sm:$0xff] }
 0x1f2   : > { %v1585_v43 = vsel %vm1581_vm13, %v1579_v6, %v1583_v23  ;;  %v779_v31 = vmul.f32 0.01, %v775_v11  ;;  %v1532_v30 = vmul.f32 %v1530_v28, %v1528_v36  ;;  %v722_v21 = vsel %vm718_vm14, %v716_v29, %v720_v59 }
 0x1f3   : > { %v659_v44 = vadd.f32 %v657_v0, %v623_v53  ;;  %v1589_v16 = vmul.f32 %v1587_v33, %v1585_v43  ;;  %vm777_vm0 = vcmp.gt.f32.partialorder %v775_v11, 0.0  ;;  %v3641_v19 = vstv %s2779_s9  ;;  %s3667_s9 = sld [smem:[#allocation6_spill]] }
 0x1f4   : > { %v969_v54 = vmul.f32 %v2887_v5, %v3641_v19  ;;  %v1068_v27 = vsel %vm1064_vm15, %v1062_v60, %v1066_v13  ;;  %v1354_v45 = vmul.f32 0.01, %v1350_v22  ;;  %vm1352_vm2 = vcmp.gt.f32.partialorder %v1350_v22, 0.0 }
 0x1f5   : > { %vm661_vm1 = vcmp.gt.f32.partialorder %v659_v44, 0.0  ;;  %v663_v20 = vmul.f32 0.01, %v659_v44  ;;  %v937_v4 = vpop.permute.xlu1 %936  ;;  %v3293_v34 = vadd.f32 %v1589_v16, %v1532_v30  ;;  %v3642_v39 = vstv %s2995_s12 }
 0x1f6   : > { %v943_v29 = vadd.f32 %v937_v4, %v3155_v62  ;;  %v1018_v6 = vmul.f32 %v3642_v39, %v2858_v49  ;;  %v3643_v2 = vstv %s2997_s13  ;;  %v781_v37 = vsel %vm777_vm0, %v775_v11, %v779_v31 }
 0x1f7   : > { %v1022_v60 = vmul.f32 %v2861_v51, %v3643_v2  ;;  %v665_v32 = vsel %vm661_vm1, %v659_v44, %v663_v20  ;;  %v1358_v52 = vstv %s3281_s19  ;;  %v3644_v59 = vstv %s2974_s11 }
 0x1f8   : > { %v945_v7 = vadd.f32 %v943_v29, %v914_v1  ;;  %v669_v53 = vmul.f32 %v3644_v59, %v665_v32  ;;  %v3645_v36 = vstv %s2913_s27  ;;  %v1072_v62 = vmul.f32 %v1070_v18, %v1068_v27 }
 0x1f9   : > { %v726_v13 = vmul.f32 %v3645_v36, %v722_v21  ;;  %v971_v23 = vadd.f32 %v969_v54, %v965_v8  ;;  %v3646_v26 = vstv %s3021_s14  ;;  %v3647_v43 = vstv %s3023_s17 }
 0x1fa   : > { %v1190_v0 = vmul.f32 %v3646_v26, %v2858_v49  ;;  %v1194_v44 = vmul.f32 %v2861_v51, %v3647_v43  ;;  %v1356_v11 = vsel %vm1352_vm2, %v1350_v22, %v1354_v45  ;;  %v994_v31 = vpop.permute.xlu1 %993  ;;  %v1024_v1 = vadd.f32 %v1022_v60, %v1018_v6 }
 0x1fb   : > { %v3648_v30 = vstv %s3032_s18  ;;  %v728_v21 = vadd.f32 %v726_v13, %v669_v53  ;;  %v3649_v19 = vstv %s2865_s20  ;;  %v949_v20 = vmul.f32 0.01, %v945_v7  ;;  %s3668_s20 = sshll.u32 %s3667_s9, 4 }
 0x1fc   : > { %v1028_v16 = vmul.f32 %v2887_v5, %v3648_v30  ;;  %v785_v27 = vmul.f32 %v3649_v19, %v781_v37  ;;  %v1000_v8 = vadd.f32 %v994_v31, %v3102_v48  ;;  %vm607_vm4 = vcmp.gt.f32.partialorder %v3304_v10, 0.0  ;;  %s224_s27 = scalar_lea.vmem %s3669_s24, %s3668_s20 }
 0x1fd   : > { %vm947_vm5 = vcmp.gt.f32.partialorder %v945_v7, 0.0  ;;  %v1074_v4 = vadd.f32 %v1072_v62, %v3208_v56  ;;  %v1360_v22 = vmul.f32 %v1358_v52, %v1356_v11  ;;  %v1196_v29 = vadd.f32 %v1194_v44, %v1190_v0 }
 0x1fe   : > { %v787_v54 = vadd.f32 %v785_v27, %v728_v21  ;;  %v1002_v45 = vadd.f32 %v1000_v8, %v971_v23  ;;  %v3650_v39 = vstv %s3049_s7  ;;  %v1030_v2 = vadd.f32 %v1028_v16, %v1024_v1 }
 0x1ff   : > { %v1200_v6 = vmul.f32 %v2887_v5, %v3650_v39  ;;  %v1306_v48 = vmul.f32 %v1305_v3, %v2858_v49  ;;  %v1310_v56 = vmul.f32 %v2861_v51, %v1309_v17  ;;  %v951_v32 = vsel %vm947_vm5, %v945_v7, %v949_v20  ;;  %v1053_v59 = vpop.permute.xlu1 %1052 }
 0x200   : > { %v3333_v60 = vsel %vm607_vm4, %v787_v54, -1e+30  ;;  %vm1004_vm7 = vcmp.gt.f32.partialorder %v1002_v45, 0.0  ;;  %v1006_v37 = vmul.f32 0.01, %v1002_v45  ;;  %v1059_v36 = vadd.f32 %v1053_v59, %v3222_v61  ;;  %v2533_v54 = vld [vmem:[%s2769_s29 + $0x8] sm:$0xff] }
 0x201   : > { %v791_v53 = vsel %vm637_vm3, %v3333_v60, -inf  ;;  %v3346_v3 = vsel %vm608_vm6, %v1074_v4, -1e+30  ;;  %v1362_v13 = vadd.f32 %v1360_v22, %v3266_v41  ;;  %v1202_v7 = vadd.f32 %v1200_v6, %v1196_v29  ;;  %v2534_v22 = vld [vmem:[%s2769_s29 + $0x18] sm:$0xff] }
 0x202   : > { %792 = vmax.xlane.f32.xlu1 %v791_v53  ;;  %v1008_v17 = vsel %vm1004_vm7, %v1002_v45, %v1006_v37  ;;  %v1061_v62 = vadd.f32 %v1059_v36, %v1030_v2  ;;  %v1312_v23 = vadd.f32 %v1310_v56, %v1306_v48  ;;  %v3651_v26 = vstv %s3061_s1  ;;  %s3653_s1 = sld [smem:[#allocation13_spill]] }
 0x203   : > { %v955_v0 = vmul.f32 %v3651_v26, %v951_v32  ;;  %v3652_v43 = vstv %s2891_s21  ;;  %v1080_v11 = vsel %vm637_vm3, %v3346_v3, -inf  ;;  %v1316_v61 = vmul.f32 %v2887_v5, %v1315_v9 }
 0x204   : > { %v1012_v44 = vmul.f32 %v3652_v43, %v1008_v17  ;;  %v1535_v31 = vmul.f32 %v1534_v63, %v2858_v49  ;;  %v1539_v41 = vmul.f32 %v2861_v51, %v1538_v57  ;;  %vm1063_vm8 = vcmp.gt.f32.partialorder %v1061_v62, 0.0  ;;  %v1225_v30 = vpop.permute.xlu1 %1224  ;;  %v2535_v17 = vld [vmem:[%s2769_s29 + $0x28] sm:$0xff] }
 0x205   : > { %v1065_v1 = vmul.f32 0.01, %v1061_v62  ;;  %v3366_v16 = vsel %vm608_vm6, %v1362_v13, -1e+30  ;;  %v1294_v21 = vmul.f32 0.01, %v3133_v12  ;;  %v1231_v49 = vadd.f32 %v1225_v30, %v3191_v38 }
 0x206   : > { %1081 = vmax.xlane.f32.xlu1 %v1080_v11  ;;  %v1014_v9 = vadd.f32 %v1012_v44, %v955_v0  ;;  %vm1292_vm9 = vcmp.gt.f32.partialorder %v3133_v12, 0.0  ;;  %v1368_v57 = vsel %vm637_vm3, %v3366_v16, -inf  ;;  %v1318_v19 = vadd.f32 %v1316_v61, %v1312_v23 }
 0x207   : > { %v1067_v51 = vsel %vm1063_vm8, %v1061_v62, %v1065_v1  ;;  %v1233_v63 = vadd.f32 %v1231_v49, %v1202_v7  ;;  %v1541_v20 = vadd.f32 %v1539_v41, %v1535_v31  ;;  %v1545_v8 = vmul.f32 %v2887_v5, %v1544_v15 }
 0x208   : > { %v1071_v27 = vmul.f32 %v1070_v18, %v1067_v51  ;;  %v3654_v4 = vstv %s2930_s6  ;;  %v3655_v45 = vstv %s3653_s1  ;;  %v1296_v39 = vsel %vm1292_vm9, %v3133_v12, %v1294_v21 }
 0x209   : > { %v1595_v38 = vmul.f32 %v2533_v54, %v3654_v4  ;;  %v1599_v29 = vmul.f32 %v2534_v22, %v3655_v45  ;;  %vm1235_vm10 = vcmp.gt.f32.partialorder %v1233_v63, 0.0  ;;  %v1237_v6 = vmul.f32 0.01, %v1233_v63  ;;  %v1341_v2 = vpop.permute.xlu1 %1340 }
 0x20a   : > { %1369 = vmax.xlane.f32.xlu1 %v1368_v57  ;;  %v1073_v18 = vadd.f32 %v1071_v27, %v1014_v9  ;;  %v1347_v48 = vadd.f32 %v1341_v2, %v3264_v35  ;;  %v3657_v12 = vstv %s2949_s8  ;;  %v1547_v53 = vadd.f32 %v1545_v8, %v1541_v20 }
 0x20b   : > { %v1239_v56 = vsel %vm1235_vm10, %v1233_v63, %v1237_v6  ;;  %v1300_v59 = vmul.f32 %v3657_v12, %v1296_v39  ;;  %v1601_v36 = vadd.f32 %v1599_v29, %v1595_v38  ;;  %v3658_v7 = vstv %s3656_s2 }
 0x20c   : > { %v3388_v5 = vsel %vm607_vm4, %v1073_v18, -1e+30  ;;  %v1349_v15 = vadd.f32 %v1347_v48, %v1318_v19  ;;  %v1243_v37 = vmul.f32 %v1242_v14, %v1239_v56  ;;  %v1605_v62 = vmul.f32 %v2535_v17, %v3658_v7 }
 0x20d   : > { %v1077_v32 = vsel %vm637_vm3, %v3388_v5, -inf  ;;  %v1525_v26 = vmul.f32 0.01, %v3148_v47  ;;  %vm1523_vm12 = vcmp.gt.f32.partialorder %v3148_v47, 0.0  ;;  %v1641_v43 = vmul.f32 0.01, %v3184_v40 }
 0x20e   : > { %1078 = vmax.xlane.f32.xlu0 %v1077_v32  ;;  %vm1351_vm11 = vcmp.gt.f32.partialorder %v1349_v15, 0.0  ;;  %v1353_v35 = vmul.f32 0.01, %v1349_v15  ;;  %v1570_v13 = vpop.permute.xlu1 %1569  ;;  %v1302_v23 = vadd.f32 %v1300_v59, %v1243_v37  ;;  %vm1639_vm13 = vcmp.gt.f32.partialorder %v3184_v40, 0.0 }
 0x20f   : > { %v1576_v0 = vadd.f32 %v1570_v13, %v3254_v58  ;;  %v1607_v61 = vadd.f32 %v1605_v62, %v1601_v36  ;;  %v1527_v31 = vsel %vm1523_vm12, %v3148_v47, %v1525_v26  ;;  %v1643_v49 = vsel %vm1639_vm13, %v3184_v40, %v1641_v43 }
 0x210   : > { %v1355_v14 = vsel %vm1351_vm11, %v1349_v15, %v1353_v35  ;;  %v1646_v51 = vstv %s3396_s3  ;;  %v1531_v57 = vmul.f32 %v1530_v28, %v1527_v31  ;;  %vm1800_vm9 = vcmask 523264  }
 0x211   : > { %v1578_v44 = vadd.f32 %v1576_v0, %v1547_v53  ;;  %v1359_v11 = vmul.f32 %v1358_v52, %v1355_v14  ;;  %v1647_v20 = vmul.f32 %v1646_v51, %v1643_v49 }
 0x213   : > { %vm1580_vm14 = vcmp.gt.f32.partialorder %v1578_v44, 0.0  ;;  %v1582_v41 = vmul.f32 0.01, %v1578_v44  ;;  %v1633_v1 = vpop.permute.xlu1 %1632  ;;  %v1361_v58 = vadd.f32 %v1359_v11, %v1302_v23 }
 0x214   : > { %v1636_v30 = vadd.f32 %v1633_v1, %v3165_v42 }
 0x215   : > { %v1584_v9 = vsel %vm1580_vm14, %v1578_v44, %v1582_v41  ;;  %v1363_v21 = vsel %vm607_vm4, %v1361_v58, -1e+30 }
 0x216   : > { %v1638_v52 = vadd.f32 %v1636_v30, %v1607_v61  ;;  %v1365_v63 = vsel %vm637_vm3, %v1363_v21, -inf  ;;  %v1588_v47 = vmul.f32 %v1587_v33, %v1584_v9 }
 0x217   : > { %1366 = vmax.xlane.f32.xlu0 %v1365_v63 }
 0x218   : > { %vm1640_vm15 = vcmp.gt.f32.partialorder %v1638_v52, 0.0  ;;  %v1642_v19 = vmul.f32 0.01, %v1638_v52  ;;  %v1590_v27 = vadd.f32 %v1588_v47, %v1531_v57 }
 0x21a   : > { %v1649_v42 = vadd.f32 %v1647_v20, %v1590_v27  ;;  %v1644_v8 = vsel %vm1640_vm15, %v1638_v52, %v1642_v19 }
 0x21b   : > { %v1648_v54 = vmul.f32 %v1646_v51, %v1644_v8 }
 0x21c   : > { %v1651_v4 = vsel %vm607_vm4, %v1649_v42, -1e+30 }
 0x21d   : > { %v1653_v40 = vsel %vm637_vm3, %v1651_v4, -inf  ;;  %v1650_v38 = vadd.f32 %v1648_v54, %v3293_v34 }
 0x21e   : > { %1654 = vmax.xlane.f32.xlu0 %v1653_v40 }
 0x21f   : > { %v1652_v28 = vsel %vm608_vm6, %v1650_v38, -1e+30 }
 0x220   : > { %v1656_v33 = vsel %vm637_vm3, %v1652_v28, -inf }
 0x221   : > { %1657 = vmax.xlane.f32.xlu1 %v1656_v33 }
 0x26f   : > { %v796_v22 = vpop.xlane.xlu0 %795 }
 0x270   : > { %v798_v45 = vsub.f32 %v3195_v24, %v796_v22 }
 0x272   : > { %v801_v29 = vmul.f32 1.442695, %v798_v45 }
 0x274   : > { %2489 = vpow2.f32 %v801_v29 }
 0x27e   : > { %v2490_v39 = vpop.eup %2489 }
 0x27f   : > { %v3429_v6 = vsel %vm608_vm6, %v2490_v39, 0.0 }
 0x280   : > { %v808_v34 = vsel %vm637_vm3, %v3429_v6, 0.0 }
 0x281   : > { %809 = vadd.xlane.f32.xlu1 %v808_v34 }
 0x28f   : > { %v793_v2 = vpop.xlane.xlu1 %792 }
 0x290   : > { %v797_v18 = vsub.f32 %v3333_v60, %v793_v2 }
 0x292   : > { %v799_v48 = vmul.f32 1.442695, %v797_v18  ;;  %v3659_v18 = vld [vmem:[#allocation11_spill] sm:$0xff] }
 0x293   : > { %v1082_v56 = vpop.xlane.xlu1 %1081 }
 0x294   : > { %2491 = vpow2.f32 %v799_v48  ;;  %v1084_v15 = vsub.f32 %v3346_v3, %v1082_v56 }
 0x296   : > { %v1087_v24 = vmul.f32 1.442695, %v1084_v15 }
 0x297   : > { %v1370_v32 = vpop.xlane.xlu1 %1369 }
 0x298   : > { %2493 = vpow2.f32 %v1087_v24  ;;  %v1372_v37 = vsub.f32 %v3366_v16, %v1370_v32 }
 0x29a   : > { %v1375_v12 = vmul.f32 1.442695, %v1372_v37 }
 0x29b   : > { %v1079_v59 = vpop.xlane.xlu0 %1078 }
 0x29c   : > { %2495 = vpow2.f32 %v1375_v12  ;;  %v1083_v53 = vsub.f32 %v3388_v5, %v1079_v59 }
 0x29e   : > { %v2492_v36 = vpop.eup %2491  ;;  %v1085_v35 = vmul.f32 1.442695, %v1083_v53 }
 0x29f   : > { %v803_v60 = vsel %vm607_vm4, %v2492_v36, 0.0 }
 0x2a0   : > { %v805_v13 = vsel %vm637_vm3, %v803_v60, 0.0  ;;  %2497 = vpow2.f32 %v1085_v35 }
 0x2a1   : > { %806 = vadd.xlane.f32.xlu0 %v805_v13 }
 0x2a2   : > { %v2494_v3 = vpop.eup %2493 }
 0x2a3   : > { %v3442_v17 = vsel %vm608_vm6, %v2494_v3, 0.0  ;;  %v1791_v3 = vld [vmem:[%s3660_s23] sm:$0xff] }
 0x2a4   : > { %v1094_v16 = vsel %vm637_vm3, %v3442_v17, 0.0  ;;  %v1367_v5 = vpop.xlane.xlu0 %1366 }
 0x2a5   : > { %1095 = vadd.xlane.f32.xlu1 %v1094_v16  ;;  %v1371_v62 = vsub.f32 %v1363_v21, %v1367_v5  ;;  %v1794_v5 = vld [vmem:[%s3661_s0 + $0x30] sm:$0xff] }
 0x2a6   : > { %v2496_v7 = vpop.eup %2495 }
 0x2a7   : > { %v3448_v23 = vsel %vm608_vm6, %v2496_v7, 0.0  ;;  %v1373_v0 = vmul.f32 1.442695, %v1371_v62  ;;  %v1793_v7 = vld [vmem:[%s3661_s0 + $0x20] sm:$0xff] }
 0x2a8   : > { %v1382_v26 = vsel %vm637_vm3, %v3448_v23, 0.0  ;;  %v1795_v62 = vld [vmem:[%s3661_s0 + $0x40] sm:$0xff] }
 0x2a9   : > { %1383 = vadd.xlane.f32.xlu1 %v1382_v26  ;;  %2499 = vpow2.f32 %v1373_v0  ;;  %v1796_v26 = vld [vmem:[%s3661_s0 + $0x50] sm:$0xff] }
 0x2aa   : > { %v2498_v14 = vpop.eup %2497  ;;  %v2389_v0 = vpack.c.bf16 %v1796_v26, %v1795_v62 }
 0x2ab   : > { %v1089_v43 = vsel %vm607_vm4, %v2498_v14, 0.0  ;;  %v1655_v44 = vpop.xlane.xlu0 %1654  ;;  %v1797_v14 = vld [vmem:[%s3661_s0 + $0x60] sm:$0xff] }
 0x2ac   : > { %v1091_v11 = vsel %vm637_vm3, %v1089_v43, 0.0  ;;  %v1659_v61 = vsub.f32 %v1651_v4, %v1655_v44 }
 0x2ad   : > { %1092 = vadd.xlane.f32.xlu0 %v1091_v11  ;;  %v1767_v11 = vadd.f32 %v3142_v25, %v2868_v55 }
 0x2ae   : > { %v1661_v31 = vmul.f32 1.442695, %v1659_v61  ;;  %v1658_v41 = vpop.xlane.xlu1 %1657  ;;  %v1766_v61 = vadd.f32 %v3304_v10, %v2851_v46 }
 0x2af   : > { %v1660_v1 = vsub.f32 %v1652_v28, %v1658_v41 }
 0x2b0   : > { %2501 = vpow2.f32 %v1661_v31  ;;  %v1771_v31 = vsel %vm637_vm3, %v1767_v11, 0.0  ;;  %v1768_v41 = vsel %vm637_vm3, %v1766_v61, 0.0 }
 0x2b1   : > { %v1663_v58 = vmul.f32 1.442695, %v1660_v1 }
 0x2b3   : > { %v2500_v30 = vpop.eup %2499  ;;  %2503 = vpow2.f32 %v1663_v58 }
 0x2b4   : > { %v1377_v9 = vsel %vm607_vm4, %v2500_v30, 0.0 }
 0x2b5   : > { %v1379_v21 = vsel %vm637_vm3, %v1377_v9, 0.0 }
 0x2b6   : > { %1380 = vadd.xlane.f32.xlu0 %v1379_v21 }
 0x2ba   : > { %v2502_v49 = vpop.eup %2501 }
 0x2bb   : > { %v1665_v51 = vsel %vm607_vm4, %v2502_v49, 0.0 }
 0x2bc   : > { %v1667_v52 = vsel %vm637_vm3, %v1665_v51, 0.0 }
 0x2bd   : > { %v2504_v63 = vpop.eup %2503  ;;  %1668 = vadd.xlane.f32.xlu0 %v1667_v52 }
 0x2be   : > { %v1666_v57 = vsel %vm608_vm6, %v2504_v63, 0.0 }
 0x2bf   : > { %v1670_v47 = vsel %vm637_vm3, %v1666_v57, 0.0 }
 0x2c0   : > { %1671 = vadd.xlane.f32.xlu1 %v1670_v47 }
 0x2c1   : > { %1769 = vadd.xlane.f32.xlu0 %v1768_v41 }
 0x2c4   : > { %1772 = vadd.xlane.f32.xlu1 %v1771_v31 }
 0x30e   : > { %v810_v19 = vpop.xlane.xlu1 %809 }
 0x30f   : > { %2505 = vrcp.f32 %v810_v19  ;;  %vm812_vm0 = vcmp.gt.f32.partialorder %v810_v19, 0.0 }
 0x319   : > { %v2506_v20 = vpop.eup %2505 }
 0x31a   : > { %v816_v54 = vsel %vm812_vm0, %v2506_v20, 0.0 }
 0x31b   : > { %v818_v28 = vmul.f32 %v816_v54, %v3429_v6 }
 0x32e   : > { %v807_v27 = vpop.xlane.xlu0 %806 }
 0x32f   : > { %2507 = vrcp.f32 %v807_v27  ;;  %vm811_vm1 = vcmp.gt.f32.partialorder %v807_v27, 0.0 }
 0x332   : > { %v1096_v42 = vpop.xlane.xlu1 %1095 }
 0x333   : > { %2509 = vrcp.f32 %v1096_v42  ;;  %vm1098_vm6 = vcmp.gt.f32.partialorder %v1096_v42, 0.0 }
 0x336   : > { %v1384_v33 = vpop.xlane.xlu1 %1383 }
 0x337   : > { %vm1386_vm4 = vcmp.gt.f32.partialorder %v1384_v33, 0.0 }
 0x339   : > { %v2508_v8 = vpop.eup %2507 }
 0x33a   : > { %v815_v4 = vsel %vm811_vm1, %v2508_v8, 0.0  ;;  %v1093_v38 = vpop.xlane.xlu0 %1092 }
 0x33b   : > { %v817_v40 = vmul.f32 %v815_v4, %v803_v60  ;;  %2511 = vrcp.f32 %v1093_v38  ;;  %vm1097_vm2 = vcmp.gt.f32.partialorder %v1093_v38, 0.0 }
 0x33c   : > { %2513 = vrcp.f32 %v1384_v33 }
 0x33d   : > { %2296 = vmatprep.mubr.msk.f32.mxu1 %vm637_vm3, %v817_v40  ;;  %v2510_v22 = vpop.eup %2509 }
 0x33e   : > { %2297 = vmatmul.mubr.msk.f32.vlgmr.msra.gmra.mrb[8].mxu1 %vm637_vm3, %v818_v28  ;;  %v1102_v39 = vsel %vm1098_vm6, %v2510_v22, 0.0 }
 0x33f   : > { %2376 = vmatpush3.bf16.msra.mxu1 %v2683_v50  ;;  %v1104_v6 = vmul.f32 %v1102_v39, %v3442_v17  ;;  %v1792_v17 = vld [vmem:[%s3661_s0 + $0x10] sm:$0xff] }
 0x340   : > { %v2381_v16 = vpack.c.bf16 %v1792_v17, %v1791_v3  ;;  %v1972_v3 = vld [vmem:[%s3661_s0 + $0x78] sm:$0xff] }
 0x342   : > { %2382 = vmatprep.subr.bf16.mxu1 %v2381_v16 }
 0x343   : > { %v1381_v45 = vpop.xlane.xlu0 %1380 }
 0x344   : > { %2515 = vrcp.f32 %v1381_v45  ;;  %vm1385_vm5 = vcmp.gt.f32.partialorder %v1381_v45, 0.0 }
 0x345   : > { %v2512_v29 = vpop.eup %2511 }
 0x346   : > { %v1101_v34 = vsel %vm1097_vm2, %v2512_v29, 0.0  ;;  %v2514_v48 = vpop.eup %2513 }
 0x347   : > { %v1103_v2 = vmul.f32 %v1101_v34, %v1089_v43  ;;  %v1390_v24 = vsel %vm1386_vm4, %v2514_v48, 0.0  ;;  %v1798_v43 = vld [vmem:[%s3661_s0 + $0x70] sm:$0xff] }
 0x348   : > { %v1392_v12 = vmul.f32 %v1390_v24, %v3448_v23  ;;  %v2385_v23 = vpack.c.bf16 %v1794_v5, %v1793_v7  ;;  %v2393_v44 = vpack.c.bf16 %v1798_v43, %v1797_v14  ;;  %v3663_v5 = vld [vmem:[#allocation8_spill] sm:$0xff] }
 0x349   : > { %2303 = vmatprep.mubr.msk.f32.mxu0 %vm637_vm3, %v1103_v2 }
 0x34a   : > { %2304 = vmatmul.mubr.msk.f32.vlgmr.msra.gmra.mrb[6].mxu0 %vm637_vm3, %v1104_v6  ;;  %v1669_v50 = vpop.xlane.xlu0 %1668 }
 0x34b   : > { %2380 = vmatpush3.bf16.msra.mxu0 %v3659_v18  ;;  %2517 = vrcp.f32 %v1669_v50  ;;  %vm1673_vm7 = vcmp.gt.f32.partialorder %v1669_v50, 0.0 }
 0x34d   : > { %v1672_v56 = vpop.xlane.xlu1 %1671 }
 0x34e   : > { %v2516_v15 = vpop.eup %2515  ;;  %2519 = vrcp.f32 %v1672_v56  ;;  %vm1674_vm8 = vcmp.gt.f32.partialorder %v1672_v56, 0.0  ;;  %v1770_v8 = vpop.xlane.xlu0 %1769 }
 0x34f   : > { %v1389_v32 = vsel %vm1385_vm5, %v2516_v15, 0.0 }
 0x350   : > { %v1391_v37 = vmul.f32 %v1389_v32, %v1377_v9 }
 0x351   : > { %v1773_v42 = vpop.xlane.xlu1 %1772 }
 0x352   : > { %2310 = vmatprep.mubr.msk.f32.mxu1 %vm637_vm3, %v1391_v37  ;;  %2521 = vrsqrt.f32 %v1773_v42 }
 0x353   : > { %2311 = vmatmul.mubr.msk.f32.vlgmr.msra.gmra.mrb[10].mxu1 %vm637_vm3, %v1392_v12  ;;  %2523 = vrsqrt.f32 %v1770_v8  ;;  %v1967_v12 = vld [vmem:[%s3661_s0 + $0x28] sm:$0xff] }
 0x354   : > { %2384 = vmatpush3.bf16.msra.mxu1 %v2381_v16  ;;  %v3662_v16 = vld [vmem:[#allocation7_spill] sm:$0xff] }
 0x355   : > { %v2518_v59 = vpop.eup %2517  ;;  %2386 = vmatprep.subr.bf16.mxu1 %v2385_v23  ;;  %v268_v7 = vsub.s32 4, %v3662_v16 }
 0x356   : > { %v1677_v53 = vsel %vm1673_vm7, %v2518_v59, 0.0  ;;  %v1968_v59 = vld [vmem:[%s3661_s0 + $0x38] sm:$0xff] }
 0x357   : > { %v1679_v36 = vmul.f32 %v1677_v53, %v1665_v51  ;;  %v2405_v53 = vpack.c.bf16 %v1968_v59, %v1967_v12  ;;  %v269_v62 = vrot.slane %v3663_v5, %v268_v7 }
 0x358   : > { %v2520_v35 = vpop.eup %2519  ;;  %2388 = vmatpush3.bf16.msra.mxu1 %v2385_v23  ;;  %v1799_v23 = vld [vmem:[%s3661_s0 + $0x80] ss:$0 sm:$0xff] }
 0x359   : > { %v1678_v60 = vsel %vm1674_vm8, %v2520_v35, 0.0  ;;  %2317 = vmatprep.mubr.msk.f32.mxu0 %vm637_vm3, %v1679_v36  ;;  %2390 = vmatprep.subr.bf16.mxu1 %v2389_v0  ;;  %v1969_v36 = vld [vmem:[%s3661_s0 + $0x48] sm:$0xff]  ;;  %v1970_v35 = vld [vmem:[%s3661_s0 + $0x58] sm:$0xff] }
 0x35a   : > { %v1680_v13 = vmul.f32 %v1678_v60, %v1666_v57  ;;  %v2409_v60 = vpack.c.bf16 %v1970_v35, %v1969_v36 }
 0x35c   : > { %2318 = vmatmul.mubr.msk.f32.vlgmr.msra.gmra.mrb[8].mxu0 %vm637_vm3, %v1680_v13  ;;  %2392 = vmatpush3.bf16.msra.mxu1 %v2389_v0  ;;  %v2522_v54 = vpop.eup %2521  ;;  %v1971_v13 = vld [vmem:[%s3661_s0 + $0x68] sm:$0xff]  ;;  %v3664_v0 = vld [vmem:[#allocation10_spill] sm:$0xff] }
 0x35d   : > { %2394 = vmatprep.subr.bf16.mxu1 %v2393_v44  ;;  %v2524_v4 = vpop.eup %2523  ;;  %v1777_v40 = vmul.f32 %v2522_v54, %v2868_v55  ;;  %v1788_v2 = vmul.f32 %v2522_v54, %v1767_v11  ;;  %v1966_v55 = vld [vmem:[%s3661_s0 + $0x18] sm:$0xff]  ;;  %v2413_v17 = vpack.c.bf16 %v1972_v3, %v1971_v13  ;;  %v519_v14 = vadd.f32 %v3664_v0, %v269_v62  ;;  %v3665_v11 = vld [vmem:[#allocation9_spill] sm:$0xff] }
 0x35e   : > { %v1776_v38 = vmul.f32 %v2524_v4, %v2851_v46  ;;  %v1787_v18 = vmul.f32 %v2524_v4, %v1766_v61  ;;  %v1965_v46 = vld [vmem:[%s3661_s0 + $0x8] sm:$0xff]  ;;  %v513_v61 = vadd.f32 %v3665_v11, %v269_v62 }
 0x35f   : > { %v1779_v28 = vsel %vm637_vm3, %v1777_v40, 0.0  ;;  %v2401_v37 = vpack.c.bf16 %v1966_v55, %v1965_v46 }
 0x360   : > { %2396 = vmatpush3.bf16.msra.mxu1 %v2393_v44  ;;  %v1778_v33 = vsel %vm637_vm3, %v1776_v38, 0.0 }
 0x361   : > { %v1780_v22 = vadd.f32 %v1779_v28, %v1778_v33 }
 0x363   : > { %v1781_v45 = vrot.slane %v1780_v22, 4 }
 0x365   : > { %v1782_v29 = vadd.f32 %v1781_v45, %v1780_v22 }
 0x367   : > { %v1783_v39 = vrot.slane %v1782_v29, 2 }
 0x369   : > { %v1784_v34 = vadd.f32 %v1783_v39, %v1782_v29 }
 0x36b   : > { %v1785_v6 = vrot.slane %v1784_v34, 1 }
 0x36d   : > { %v1786_v50 = vadd.f32 %v1785_v6, %v1784_v34 }
 0x36f   : > { %v1789_v48 = vmul.f32 %v1787_v18, %v1786_v50  ;;  %v1790_v56 = vmul.f32 %v1788_v2, %v1786_v50 }
 0x371   : > { %2343 = vmatprep.mubr.msk.f32.mxu0 %vm637_vm3, %v1789_v48 }
 0x411   : > { %v2298_v1 = vpop.f32.mrb[8].mxu1 }
 0x412   : > { %v891_v58 = vpop.f32.mrb[9].mxu1 }
 0x41d   : > { %v2305_v30 = vpop.f32.mrb[6].mxu0 }
 0x41e   : > { %v1187_v9 = vmax.f32 %v2298_v1, %v2305_v30  ;;  %v1177_v21 = vpop.f32.mrb[7].mxu0 }
 0x41f   : > { %v1186_v49 = vmax.f32 %v891_v58, %v1177_v21  ;;  %v1973_v58 = vld [vmem:[%s3661_s0 + $0x89] ss:$0 sm:$0xff] }
 0x426   : > { %v2312_v51 = vpop.f32.mrb[10].mxu1 }
 0x427   : > { %v1475_v52 = vmax.f32 %v1187_v9, %v2312_v51  ;;  %v1465_v63 = vpop.f32.mrb[11].mxu1  ;;  %v3666_v9 = vld [vmem:[#allocation12_spill] sm:$0xff] }
 0x428   : > { %v1474_v57 = vmax.f32 %v1186_v49, %v1465_v63 }
 0x42f   : > { %v2319_v25 = vpop.f32.mrb[8].mxu0 }
 0x430   : > { %v1763_v47 = vmax.f32 %v1475_v52, %v2319_v25  ;;  %v1753_v19 = vpop.f32.mrb[9].mxu0 }
 0x431   : > { %v1762_v10 = vmax.f32 %v1474_v57, %v1753_v19 }
 0x432   : > { %v1765_v20 = vmax.f32 %v1763_v47, 0.0 }
 0x433   : > { %v1764_v27 = vmax.f32 %v1762_v10, 0.0 }
 0x435   : > { %2336 = vmatprep.mubr.msk.f32.mxu1 %vm1800_vm9, %v1764_v27 }
 0x436   : > { %2337 = vmatmul.mubr.msk.f32.vlgmr.msra.gmra.mrb[12].mxu1 %vm1800_vm9, %v1765_v20 }
 0x509   : > { %v2338_v15 = vpop.f32.mrb[12].mxu1 }
 0x50a   : > { %v1873_v24 = vpop.f32.mrb[13].mxu1 }
 0x50b   : > { %v2397_v32 = vpack.c.bf16 %v2338_v15, %v1873_v24 }
 0x50d   : > { %2398 = vmatprep.subr.bf16.mxu0 %v2397_v32 }
 0x50e   : > { %2400 = vmatpush3.bf16.msra.mxu0 %v2397_v32 }
 0x50f   : > { %2402 = vmatprep.subr.bf16.mxu0 %v2401_v37 }
 0x511   : > { %2344 = vmatmul.mubr.msk.f32.vlgmr.msra.gmra.mrb[10].mxu0 %vm637_vm3, %v1790_v56  ;;  %vm2055_vm3 = vcmp.lt.s32.totalorder %v3666_v9, 7 }
 0x512   : > { %2404 = vmatpush3.bf16.msra.mxu0 %v2401_v37 }
 0x513   : > { %2406 = vmatprep.subr.bf16.mxu0 %v2405_v53 }
 0x516   : > { %2408 = vmatpush3.bf16.msra.mxu0 %v2405_v53 }
 0x517   : > { %2410 = vmatprep.subr.bf16.mxu0 %v2409_v60 }
 0x51a   : > { %2412 = vmatpush3.bf16.msra.mxu0 %v2409_v60 }
 0x51b   : > { %2414 = vmatprep.subr.bf16.mxu0 %v2413_v17 }
 0x51e   : > { %2416 = vmatpush3.bf16.msra.mxu0 %v2413_v17 }
 0x5e4   : > { %v2345_v26 = vpop.f32.mrb[10].mxu0 }
 0x5e5   : > { %v1960_v43 = vadd.f32 %v2345_v26, %v1799_v23  ;;  %v1954_v44 = vpop.f32.mrb[11].mxu0 }
 0x5e6   : > { %v1955_v31 = vadd.f32 %v1954_v44, %v1799_v23 }
 0x5e7   : > { %v1964_v41 = vadd.f32 %v1960_v43, %v519_v14 }
 0x5e8   : > { %v1963_v1 = vadd.f32 %v1955_v31, %v513_v61 }
 0x5ea   : > { %2362 = vmatprep.mubr.msk.f32.mxu0 %vm1800_vm9, %v1963_v1 }
 0x5eb   : > { %2363 = vmatmul.mubr.msk.f32.vlgmr.msra.gmra.mrb[12].mxu0 %vm1800_vm9, %v1964_v41 }
 0x6be   : > { %v2364_v30 = vpop.f32.mrb[12].mxu0 }
 0x6bf   : > { %v2052_v21 = vadd.f32 %v2364_v30, %v1973_v58  ;;  %v2046_v49 = vpop.f32.mrb[13].mxu0 }
 0x6c0   : > { %v2047_v51 = vadd.f32 %v2046_v49, %v1973_v58 }
 0x6c1   : > { %v2057_v52 = vsel %vm2055_vm3, %v2052_v21, -1e+30 }
 0x6c2   : > { %2060 = vmax.xlane.f32.xlu1 %v2057_v52  ;;  %v2056_v63 = vsel %vm2055_vm3, %v2047_v51, -1e+30 }
 0x6c3   : > { %2058 = vmax.xlane.f32.xlu0 %v2056_v63 }
 0x74f   : > { %v2061_v57 = vpop.xlane.xlu1 %2060 }
 0x750   : > { %v2063_v25 = vsub.f32 %v2057_v52, %v2061_v57  ;;  %v2059_v47 = vpop.xlane.xlu0 %2058 }
 0x751   : > { %v2062_v19 = vsub.f32 %v2056_v63, %v2059_v47 }
 0x752   : > { %v2066_v10 = vmul.f32 1.442695, %v2063_v25 }
 0x753   : > { %v2064_v27 = vmul.f32 1.442695, %v2062_v19 }
 0x754   : > { %2525 = vpow2.f32 %v2066_v10 }
 0x755   : > { %2527 = vpow2.f32 %v2064_v27 }
 0x75e   : > { %v2526_v20 = vpop.eup %2525 }
 0x75f   : > { %v2528_v42 = vpop.eup %2527  ;;  %v2069_v8 = vsel %vm2055_vm3, %v2526_v20, 0.0 }
 0x760   : > { %2072 = vadd.xlane.f32.xlu1 %v2069_v8  ;;  %v2068_v54 = vsel %vm2055_vm3, %v2528_v42, 0.0 }
 0x761   : > { %2070 = vadd.xlane.f32.xlu0 %v2068_v54 }
 0x7ed   : > { %v2073_v4 = vpop.xlane.xlu1 %2072 }
 0x7ee   : > { %2529 = vlog2.f32 %v2073_v4  ;;  %v2071_v40 = vpop.xlane.xlu0 %2070 }
 0x7ef   : > { %2531 = vlog2.f32 %v2071_v40 }
 0x7f8   : > { %v2530_v38 = vpop.eup %2529 }
 0x7f9   : > { %v2532_v28 = vpop.eup %2531  ;;  %v2077_v33 = vmul.f32 0.6931472, %v2530_v38 }
 0x7fa   : > { %v2075_v22 = vmul.f32 0.6931472, %v2532_v28 }
 0x7fb   : > { %v2079_v45 = vsub.f32 %v2063_v25, %v2077_v33 }
 0x7fc   : > { %v2078_v29 = vsub.f32 %v2062_v19, %v2075_v22 }
 0x7fd   : > { %v2081_v39 = vsel %vm2055_vm3, %v2079_v45, 0.0 }
 0x7fe   : > { %2083 = vst [vmem:[%s224_s27 + $0x8] sm:$0xff] %v2081_v39  ;;  %v2080_v34 = vsel %vm2055_vm3, %v2078_v29, 0.0 }
 0x7ff   : > { %2082 = vst [vmem:[%s224_s27] sm:$0xff] %v2080_v34 }
 0x800 PF: > { %s3670_s28 = sld [smem:[#allocation5_spill]] }
 0x806   : > { %s21_s23 = sadd.s32 1, %s3670_s28  }
 0x807   : > { %p18_p9 = scmp.ge.s32.totalorder %s21_s23, 6  }
 0x809   :  { %20 = sbr.rel (!%p18_p9) target bundleno = 18 (0x12), region = 73 }

</bundles_post_ra>
